<compile_context>
chip_gen: v7x
topology: tpu7x:2x2x1
jax: 0.10.0
libtpu: 0.0.40
codegen_flags: <defaults>
</compile_context>

<pallas_src>
import functools

import jax
import jax.numpy as jnp
from jax import lax
from jax.experimental import pallas as pl
from jax.experimental.pallas import tpu as pltpu

C_IN   = 3      # RGB channels
HIDDEN = 128    # hidden width of the (simplified) pose head
N_KP   = 17     # COCO keypoints (pose_resnet_50 output channels)
K_PAD  = 32     # keypoint channels padded for layout (padded rows zeroed)

MAX_STEP_PIX = 8192   # max pixels processed per grid step (VMEM-bounded)
MAX_PACK     = 8      # max crops packed into one grid step


def _round_up(x, m):
    return ((x + m - 1) // m) * m


def _cdiv(a, b):
    return (a + b - 1) // b


# ---------------------------------------------------------------------------
# Fused kernel: /255-folded 2-layer 1x1-conv pose head + running spatial argmax
#   grid = (image groups [parallel], HW tiles [arbitrary / reduction])
# ---------------------------------------------------------------------------
def _fused_pose_kernel(x_ref, w1_ref, b1_ref, w2_ref, b2_ref,
                       idx_ref, conf_ref, max_sc, idx_sc, *, hw, nb):
    """
    x_ref    : (1, C, NB*TILE_HW) f32   packed crops, channels-major, pixels on lanes
    w1_ref   : (HIDDEN, C)        f32   1/255 normalization folded in
    b1_ref   : (HIDDEN, 1)        f32
    w2_ref   : (K_PAD, HIDDEN)    bf16  (MXU input)
    b2_ref   : (K_PAD, 1)         f32
    idx_ref  : (NB, 1, K_PAD)     int32 lane-dense spatial argmax
    conf_ref : (NB, 1, K_PAD)     f32   lane-dense spatial max
    max_sc   : (NB, K_PAD, 1)     f32   running max across HW tiles
    idx_sc   : (NB, K_PAD, 1)     int32 running argmax across HW tiles
    """
    t = pl.program_id(1)
    _, c_in, npix = x_ref.shape
    tile_hw = npix // nb
    k_pad = w2_ref.shape[0]

    @pl.when(t == 0)
    def _():
        max_sc[...] = jnp.full_like(max_sc, -jnp.inf)
        idx_sc[...] = jnp.zeros_like(idx_sc)

    x = x_ref[0]                                   # (C, NB*TILE_HW)

    # ---- layer 1 on the VPU: contraction depth C=3 would waste the MXU -----
    w1 = w1_ref[...]
    h = w1[:, 0:1] * x[0:1, :]                     # (HIDDEN,1)*(1,NPIX) broadcast
    for c in range(1, c_in):
        h = h + w1[:, c:c + 1] * x[c:c + 1, :]
    h = jnp.maximum(h + b1_ref[...], 0.0)          # ReLU, f32 (HIDDEN, NPIX)
    hb = h.astype(jnp.bfloat16)                    # bf16 only at the MXU input

    # ---- layer 2 on the MXU (K = 128), f32 accumulation ---------------------
    heat = jnp.dot(w2_ref[...], hb,
                   preferred_element_type=jnp.float32) + b2_ref[...]  # (K_PAD, NPIX)

    # ---- per-image running spatial max + first-occurrence argmax ------------
    pix = lax.broadcasted_iota(jnp.int32, (1, tile_hw), 1) + t * tile_hw
    valid = pix < hw                               # masks padded tail pixels
    big = jnp.int32(2 ** 30)
    for i in range(nb):
        heat_i = jnp.where(valid, heat[:, i * tile_hw:(i + 1) * tile_hw], -jnp.inf)
        tile_max = jnp.max(heat_i, axis=-1, keepdims=True)               # (K_PAD, 1)
        tile_idx = jnp.min(jnp.where(heat_i >= tile_max, pix, big),
                           axis=-1, keepdims=True)                       # (K_PAD, 1)
        better = tile_max > max_sc[i]   # strict '>' keeps earliest index across tiles
        idx_sc[i] = jnp.where(better, tile_idx, idx_sc[i])
        max_sc[i] = jnp.where(better, tile_max, max_sc[i])

    # ---- lane-dense writeback: (K_PAD,1) column -> (1,K_PAD) row ------------
    @pl.when(t == pl.num_programs(1) - 1)
    def _():
        eye = (lax.broadcasted_iota(jnp.int32, (k_pad, k_pad), 0)
               == lax.broadcasted_iota(jnp.int32, (k_pad, k_pad), 1))
        for i in range(nb):
            conf_ref[i] = jnp.sum(jnp.where(eye, max_sc[i], 0.0),
                                  axis=0, keepdims=True)
            idx_ref[i] = jnp.sum(jnp.where(eye, idx_sc[i].astype(jnp.float32), 0.0),
                                 axis=0, keepdims=True).astype(jnp.int32)


# ---------------------------------------------------------------------------
# Pose detector forward (hot path): NCHW crops -> keypoints (x, y, conf)
# ---------------------------------------------------------------------------
@jax.jit
def pose_detector_forward(cropped_images_nchw, params):
    w1, b1, w2_bf16, b2 = params
    N, C, H, W = cropped_images_nchw.shape
    HW = H * W

    # Tiling: pad HW to a lane multiple, cap the per-step pixel count, and pack
    # several small crops per step.  Either NB>1 and the whole (padded) image
    # fits in one tile, or NB==1 and a large image is tiled along HW.
    hw_pad = _round_up(HW, 128)
    tile_hw = min(hw_pad, MAX_STEP_PIX)                 # multiple of 128, <= 8192
    n_hw_tiles = _cdiv(HW, tile_hw)
    hw_alloc = n_hw_tiles * tile_hw
    nb = max(1, min(MAX_PACK, MAX_STEP_PIX // tile_hw, N))
    n_groups = _cdiv(N, nb)
    nb = _cdiv(N, n_groups)                             # rebalance: padding waste < n_groups
    n_pad = n_groups * nb

    x = cropped_images_nchw.reshape(N, C, HW)
    x = jnp.pad(x, ((0, n_pad - N), (0, 0), (0, hw_alloc - HW)))
    # Pack NB crops per grid step along the lane (pixel) axis.  For nb == 1 the
    # transpose is over a size-1 axis (pure reshape).
    x = x.reshape(n_groups, nb, C, hw_alloc).transpose(0, 2, 1, 3).reshape(
        n_groups, C, nb * hw_alloc)

    kernel = functools.partial(_fused_pose_kernel, hw=HW, nb=nb)
    flops = 2 * n_pad * hw_alloc * (C * HIDDEN + HIDDEN * K_PAD)
    bytes_accessed = (x.size * 4 + w1.size * 4 + b1.size * 4
                      + w2_bf16.size * 2 + b2.size * 4 + n_pad * K_PAD * 8)

    idx, conf = pl.pallas_call(
        kernel,
        out_shape=(jax.ShapeDtypeStruct((n_pad, 1, K_PAD), jnp.int32),
                   jax.ShapeDtypeStruct((n_pad, 1, K_PAD), jnp.float32)),
        grid_spec=pltpu.PrefetchScalarGridSpec(
            num_scalar_prefetch=0,
            grid=(n_groups, n_hw_tiles),
            in_specs=[
                pl.BlockSpec((1, C, nb * tile_hw), lambda g, t: (g, 0, t)),
                pl.BlockSpec((HIDDEN, C), lambda g, t: (0, 0)),
                pl.BlockSpec((HIDDEN, 1), lambda g, t: (0, 0)),
                pl.BlockSpec((K_PAD, HIDDEN), lambda g, t: (0, 0)),
                pl.BlockSpec((K_PAD, 1), lambda g, t: (0, 0)),
            ],
            out_specs=(pl.BlockSpec((nb, 1, K_PAD), lambda g, t: (g, 0, 0)),
                       pl.BlockSpec((nb, 1, K_PAD), lambda g, t: (g, 0, 0))),
            scratch_shapes=[pltpu.VMEM((nb, K_PAD, 1), jnp.float32),
                            pltpu.VMEM((nb, K_PAD, 1), jnp.int32)],
        ),
        compiler_params=pltpu.CompilerParams(
            dimension_semantics=("parallel", "arbitrary"),
            vmem_limit_bytes=32 * 1024 * 1024),
        cost_estimate=pl.CostEstimate(flops=flops, transcendentals=0,
                                      bytes_accessed=bytes_accessed),
    )(x, w1, b1, w2_bf16, b2)

    idx = idx[:N, 0, :N_KP]
    conf = conf[:N, 0, :N_KP]
    kp_x = (idx % W).astype(jnp.float32)
    kp_y = (idx // W).astype(jnp.float32)
    return jnp.stack([kp_x, kp_y, conf], axis=-1)        # (N, 17, 3)


# ---------------------------------------------------------------------------
# PoseExtractor wrapper (forward-pass semantics, synthetic detector/tracker)
# ---------------------------------------------------------------------------
class PoseExtractorPallas:
    def __init__(self, is_half=False, key=None):
        # TODO(synk): YoloV8 detector, ByteTrack tracker, checkpoint loading and
        # Timer/AverageMeter FPS printing have no Pallas equivalent; detections
        # and track metadata are synthesized deterministically instead.
        # TODO(synk): is_half / fp16-on-CUDA path not mirrored (bf16 used only at
        # the MXU input, f32 elsewhere).
        if key is None:
            key = jax.random.PRNGKey(0)
        k1, k2, k3, k4 = jax.random.split(key, 4)
        w1 = jax.random.normal(k1, (HIDDEN, C_IN), jnp.float32) * 0.05
        b1 = jax.random.normal(k2, (HIDDEN, 1), jnp.float32) * 0.05
        w2 = jax.random.normal(k3, (K_PAD, HIDDEN), jnp.float32) * 0.05
        b2 = jax.random.normal(k4, (K_PAD, 1), jnp.float32) * 0.05
        # zero padded (non-COCO) keypoint rows so they never affect results
        kp_mask = (jnp.arange(K_PAD) < N_KP)[:, None]
        w2 = jnp.where(kp_mask, w2, 0.0)
        b2 = jnp.where(kp_mask, b2, 0.0)
        # fold `cropped_images / 255` into layer 1; layer-2 weights stored bf16
        self.params = (w1 * (1.0 / 255.0), b1, w2.astype(jnp.bfloat16), b2)
        self.last_n = 5

    def __call__(self, frame, frame_number):
        # frame: (H_f, W_f, 3) float32 pixel values in [0, 255]
        # Synthetic "yolo + tracker" result: 2 tracked persons, 16x16 crops.
        boxes_xyxy = jnp.array([[0, 0, 16, 16], [8, 8, 24, 24]], dtype=jnp.int32)
        track_id = jnp.array([1, 2], dtype=jnp.int32)
        track_class = jnp.array([0, 0], dtype=jnp.int32)
        track_conf = jnp.array([0, 0], dtype=jnp.int32)  # ref code casts conf to int

        # crop_bounding_box equivalent (fixed-size crops of the frame)
        crops = [
            jax.lax.dynamic_slice(frame, (0, 0, 0), (16, 16, 3)),
            jax.lax.dynamic_slice(frame, (8, 8, 0), (16, 16, 3)),
        ]
        cropped_hwc = jnp.stack(crops)                           # (N, 16, 16, 3)
        cropped_nchw = jnp.transpose(cropped_hwc, (0, 3, 1, 2))  # NCHW like PyTorch

        current_pose = pose_detector_forward(cropped_nchw, self.params)

        # TODO(synk): PoseStorage keeps cross-frame history; here last-n is the
        # current pose repeated (single-frame, stateless stand-in).
        track_pose_last_n = jnp.repeat(current_pose[:, None], self.last_n, axis=1)

        return (track_id, boxes_xyxy, track_class, track_conf,
                track_pose_last_n, current_pose)


if __name__ == "__main__":
    key = jax.random.PRNGKey(0)
    frame = jax.random.uniform(key, (64, 64, 3), jnp.float32) * 255.0

    extractor = PoseExtractorPallas(is_half=False, key=jax.random.PRNGKey(0))
    outputs = extractor(frame, frame_number=0)
    outputs = jax.block_until_ready(outputs)

    track_id, boxes_xyxy, track_class, track_conf, pose_last_n, current_pose = outputs
    assert current_pose.shape == (2, N_KP, 3)
    assert pose_last_n.shape == (2, 5, N_KP, 3)

    # pure-JAX reference spot-check (same params & same bf16 quantization as kernel)
    crops_ref = jnp.stack([frame[0:16, 0:16, :], frame[8:24, 8:24, :]])
    x_ref = jnp.transpose(crops_ref, (0, 3, 1, 2)).reshape(2, C_IN, 16 * 16)
    w1, b1, w2_bf16, b2 = extractor.params
    hp = jax.lax.Precision.HIGHEST
    h_ref = jnp.maximum(jnp.einsum("hc,ncp->nhp", w1, x_ref, precision=hp) + b1, 0.0)
    h_bf = h_ref.astype(jnp.bfloat16).astype(jnp.float32)
    heat_ref = jnp.einsum("kh,nhp->nkp", w2_bf16.astype(jnp.float32), h_bf,
                          precision=hp) + b2
    conf_ref = jnp.max(heat_ref, axis=-1)[:, :N_KP]
    # confidences match, and the kernel's chosen locations attain the reference max
    kernel_idx = (current_pose[..., 1] * 16 + current_pose[..., 0]).astype(jnp.int32)
    heat_at_kernel = jnp.take_along_axis(
        heat_ref[:, :N_KP, :], kernel_idx[..., None], axis=-1)[..., 0]
    assert jnp.allclose(current_pose[..., 2], conf_ref, atol=1e-2, rtol=1e-2)
    assert jnp.allclose(heat_at_kernel, conf_ref, atol=1e-2, rtol=1e-2)

    print("KERNEL_OK")
</pallas_src>

<mosaic_0001>
module attributes {stable_mosaic.version = 11 : i64} {
  func.func @_fused_pose_kernel(%arg0: i32, %arg1: i32, %arg2: memref<1x3x512xf32, #tpu.memory_space<vmem>>, %arg3: memref<128x3xf32, #tpu.memory_space<vmem>>, %arg4: memref<128x1xf32, #tpu.memory_space<vmem>>, %arg5: memref<32x128xbf16, #tpu.memory_space<vmem>>, %arg6: memref<32x1xf32, #tpu.memory_space<vmem>>, %arg7: memref<2x1x32xi32, #tpu.memory_space<vmem>>, %arg8: memref<2x1x32xf32, #tpu.memory_space<vmem>>, %arg9: memref<2x32x1xf32, #tpu.memory_space<vmem>>, %arg10: memref<2x32x1xi32, #tpu.memory_space<vmem>>) attributes {dimension_semantics = [#tpu.dimension_semantics<parallel>, #tpu.dimension_semantics<arbitrary>], iteration_bounds = array<i64: 1, 1>, scalar_prefetch = 0 : i64, scratch_operands = 2 : i64, tpu.core_type = #tpu.core_type<tc>, window_params = [{transform_indices = @transform_0, window_bounds = array<i64: 1, 3, 512>}, {pipeline_mode = #tpu.pipeline_mode<synchronous>, transform_indices = @transform_1, window_bounds = array<i64: 128, 3>}, {pipeline_mode = #tpu.pipeline_mode<synchronous>, transform_indices = @transform_2, window_bounds = array<i64: 128, 1>}, {pipeline_mode = #tpu.pipeline_mode<synchronous>, transform_indices = @transform_3, window_bounds = array<i64: 32, 128>}, {pipeline_mode = #tpu.pipeline_mode<synchronous>, transform_indices = @transform_4, window_bounds = array<i64: 32, 1>}, {transform_indices = @transform_5, window_bounds = array<i64: 2, 1, 32>}, {transform_indices = @transform_6, window_bounds = array<i64: 2, 1, 32>}]} {
    %c0_i32 = arith.constant 0 : i32
    %0 = arith.cmpi eq, %arg1, %c0_i32 : i32
    %1 = arith.extui %0 : i1 to i32
    %c0_i32_0 = arith.constant 0 : i32
    %2 = arith.cmpi ne, %1, %c0_i32_0 : i32
    scf.if %2 {
      %cst_51 = arith.constant 0xFF800000 : f32
      %103 = vector.broadcast %cst_51 : f32 to vector<2x32x1xf32>
      %c0_52 = arith.constant 0 : index
      %c0_53 = arith.constant 0 : index
      %c0_54 = arith.constant 0 : index
      %104 = vector.load %arg9[%c0_52, %c0_53, %c0_54] : memref<2x32x1xf32, #tpu.memory_space<vmem>>, vector<2x32x1xf32>
      tpu.vector_store %arg9[%c0_52, %c0_53, %c0_54], %103 {strides = array<i32>} : memref<2x32x1xf32, #tpu.memory_space<vmem>>, vector<2x32x1xf32>,
      %c0_i32_55 = arith.constant 0 : i32
      %105 = vector.broadcast %c0_i32_55 : i32 to vector<2x32x1xi32>
      %c0_56 = arith.constant 0 : index
      %c0_57 = arith.constant 0 : index
      %c0_58 = arith.constant 0 : index
      %106 = vector.load %arg10[%c0_56, %c0_57, %c0_58] : memref<2x32x1xi32, #tpu.memory_space<vmem>>, vector<2x32x1xi32>
      tpu.vector_store %arg10[%c0_56, %c0_57, %c0_58], %105 {strides = array<i32>} : memref<2x32x1xi32, #tpu.memory_space<vmem>>, vector<2x32x1xi32>,
    } else {
    }
    %c0 = arith.constant 0 : index
    %c0_1 = arith.constant 0 : index
    %c0_2 = arith.constant 0 : index
    %3 = vector.load %arg2[%c0, %c0_1, %c0_2] : memref<1x3x512xf32, #tpu.memory_space<vmem>>, vector<1x3x512xf32>
    %4 = vector.shape_cast %3 : vector<1x3x512xf32> to vector<3x512xf32>
    %c0_3 = arith.constant 0 : index
    %c0_4 = arith.constant 0 : index
    %5 = vector.load %arg3[%c0_3, %c0_4] : memref<128x3xf32, #tpu.memory_space<vmem>>, vector<128x3xf32>
    %6 = vector.extract_strided_slice %5 {offsets = [0, 0], sizes = [128, 1], strides = [1, 1]} : vector<128x3xf32> to vector<128x1xf32>
    %7 = vector.extract_strided_slice %4 {offsets = [0, 0], sizes = [1, 512], strides = [1, 1]} : vector<3x512xf32> to vector<1x512xf32>
    %8 = vector.broadcast %6 : vector<128x1xf32> to vector<128x512xf32>
    %9 = vector.broadcast %7 : vector<1x512xf32> to vector<128x512xf32>
    %10 = arith.mulf %8, %9 : vector<128x512xf32>
    %11 = vector.extract_strided_slice %5 {offsets = [0, 1], sizes = [128, 1], strides = [1, 1]} : vector<128x3xf32> to vector<128x1xf32>
    %12 = vector.extract_strided_slice %4 {offsets = [1, 0], sizes = [1, 512], strides = [1, 1]} : vector<3x512xf32> to vector<1x512xf32>
    %13 = vector.broadcast %11 : vector<128x1xf32> to vector<128x512xf32>
    %14 = vector.broadcast %12 : vector<1x512xf32> to vector<128x512xf32>
    %15 = arith.mulf %13, %14 : vector<128x512xf32>
    %16 = arith.addf %10, %15 : vector<128x512xf32>
    %17 = vector.extract_strided_slice %5 {offsets = [0, 2], sizes = [128, 1], strides = [1, 1]} : vector<128x3xf32> to vector<128x1xf32>
    %18 = vector.extract_strided_slice %4 {offsets = [2, 0], sizes = [1, 512], strides = [1, 1]} : vector<3x512xf32> to vector<1x512xf32>
    %19 = vector.broadcast %17 : vector<128x1xf32> to vector<128x512xf32>
    %20 = vector.broadcast %18 : vector<1x512xf32> to vector<128x512xf32>
    %21 = arith.mulf %19, %20 : vector<128x512xf32>
    %22 = arith.addf %16, %21 : vector<128x512xf32>
    %c0_5 = arith.constant 0 : index
    %c0_6 = arith.constant 0 : index
    %23 = vector.load %arg4[%c0_5, %c0_6] : memref<128x1xf32, #tpu.memory_space<vmem>>, vector<128x1xf32>
    %24 = vector.broadcast %23 : vector<128x1xf32> to vector<128x512xf32>
    %25 = arith.addf %22, %24 : vector<128x512xf32>
    %cst = arith.constant 0.000000e+00 : f32
    %26 = vector.broadcast %cst : f32 to vector<128x512xf32>
    %27 = arith.maximumf %25, %26 : vector<128x512xf32>
    %28 = arith.truncf %27 : vector<128x512xf32> to vector<128x512xbf16>
    %c0_7 = arith.constant 0 : index
    %c0_8 = arith.constant 0 : index
    %29 = vector.load %arg5[%c0_7, %c0_8] : memref<32x128xbf16, #tpu.memory_space<vmem>>, vector<32x128xbf16>
    %cst_9 = arith.constant dense<0.000000e+00> : vector<32x512xf32>
    %30 = tpu.matmul %29, %28, %cst_9 {dimension_numbers = #tpu.dot_dimension_numbers<[1], [0], [0], [1], [0, 0, 1, 1], [], []>} : vector<32x128xbf16>, vector<128x512xbf16>, vector<32x512xf32> -> vector<32x512xf32>
    %c0_10 = arith.constant 0 : index
    %c0_11 = arith.constant 0 : index
    %31 = vector.load %arg6[%c0_10, %c0_11] : memref<32x1xf32, #tpu.memory_space<vmem>>, vector<32x1xf32>
    %32 = vector.broadcast %31 : vector<32x1xf32> to vector<32x512xf32>
    %33 = arith.addf %30, %32 : vector<32x512xf32>
    %34 = tpu.iota {dimensions = array<i32: 1>} : vector<1x256xi32>
    %c256_i32 = arith.constant 256 : i32
    %35 = arith.muli %arg1, %c256_i32 : i32
    %36 = vector.broadcast %35 : i32 to vector<1x256xi32>
    %37 = arith.addi %34, %36 : vector<1x256xi32>
    %c256_i32_12 = arith.constant 256 : i32
    %38 = vector.broadcast %c256_i32_12 : i32 to vector<1x256xi32>
    %39 = arith.cmpi slt, %37, %38 : vector<1x256xi32>
    %40 = vector.extract_strided_slice %33 {offsets = [0, 0], sizes = [32, 256], strides = [1, 1]} : vector<32x512xf32> to vector<32x256xf32>
    %cst_13 = arith.constant 0xFF800000 : f32
    %41 = vector.shape_cast %39 : vector<1x256xi1> to vector<1x256xi1>
    %42 = vector.broadcast %41 : vector<1x256xi1> to vector<32x256xi1>
    %43 = vector.broadcast %cst_13 : f32 to vector<32x256xf32>
    %44 = arith.select %42, %40, %43 : vector<32x256xi1>, vector<32x256xf32>
    %cst_14 = arith.constant dense<0xFF800000> : vector<32xf32>
    %45 = vector.multi_reduction <maximumf>, %44, %cst_14 [1] : vector<32x256xf32> to vector<32xf32>
    %46 = vector.shape_cast %45 : vector<32xf32> to vector<32x1xf32>
    %47 = vector.broadcast %46 : vector<32x1xf32> to vector<32x256xf32>
    %48 = arith.cmpf oge, %44, %47 : vector<32x256xf32>
    %c1073741824_i32 = arith.constant 1073741824 : i32
    %49 = vector.shape_cast %37 : vector<1x256xi32> to vector<1x256xi32>
    %50 = vector.broadcast %49 : vector<1x256xi32> to vector<32x256xi32>
    %51 = vector.broadcast %c1073741824_i32 : i32 to vector<32x256xi32>
    %52 = arith.select %48, %50, %51 : vector<32x256xi1>, vector<32x256xi32>
    %cst_15 = arith.constant dense<2147483647> : vector<32xi32>
    %53 = vector.multi_reduction <minsi>, %52, %cst_15 [1] : vector<32x256xi32> to vector<32xi32>
    %54 = vector.shape_cast %53 : vector<32xi32> to vector<32x1xi32>
    %c0_16 = arith.constant 0 : index
    %c0_17 = arith.constant 0 : index
    %c0_18 = arith.constant 0 : index
    %55 = vector.load %arg9[%c0_16, %c0_17, %c0_18] : memref<2x32x1xf32, #tpu.memory_space<vmem>>, vector<1x32x1xf32>
    %56 = vector.shape_cast %55 : vector<1x32x1xf32> to vector<32x1xf32>
    %57 = arith.cmpf ogt, %46, %56 : vector<32x1xf32>
    %c0_19 = arith.constant 0 : index
    %c0_20 = arith.constant 0 : index
    %c0_21 = arith.constant 0 : index
    %58 = vector.load %arg10[%c0_19, %c0_20, %c0_21] : memref<2x32x1xi32, #tpu.memory_space<vmem>>, vector<1x32x1xi32>
    %59 = vector.shape_cast %58 : vector<1x32x1xi32> to vector<32x1xi32>
    %60 = arith.select %57, %54, %59 : vector<32x1xi1>, vector<32x1xi32>
    %c0_22 = arith.constant 0 : index
    %c0_23 = arith.constant 0 : index
    %c0_24 = arith.constant 0 : index
    %61 = vector.load %arg10[%c0_22, %c0_23, %c0_24] : memref<2x32x1xi32, #tpu.memory_space<vmem>>, vector<1x32x1xi32>
    %62 = vector.shape_cast %61 : vector<1x32x1xi32> to vector<32x1xi32>
    %63 = vector.shape_cast %60 : vector<32x1xi32> to vector<1x32x1xi32>
    tpu.vector_store %arg10[%c0_22, %c0_23, %c0_24], %63 {strides = array<i32>} : memref<2x32x1xi32, #tpu.memory_space<vmem>>, vector<1x32x1xi32>,
    %c0_25 = arith.constant 0 : index
    %c0_26 = arith.constant 0 : index
    %c0_27 = arith.constant 0 : index
    %64 = vector.load %arg9[%c0_25, %c0_26, %c0_27] : memref<2x32x1xf32, #tpu.memory_space<vmem>>, vector<1x32x1xf32>
    %65 = vector.shape_cast %64 : vector<1x32x1xf32> to vector<32x1xf32>
    %66 = arith.select %57, %46, %65 : vector<32x1xi1>, vector<32x1xf32>
    %c0_28 = arith.constant 0 : index
    %c0_29 = arith.constant 0 : index
    %c0_30 = arith.constant 0 : index
    %67 = vector.load %arg9[%c0_28, %c0_29, %c0_30] : memref<2x32x1xf32, #tpu.memory_space<vmem>>, vector<1x32x1xf32>
    %68 = vector.shape_cast %67 : vector<1x32x1xf32> to vector<32x1xf32>
    %69 = vector.shape_cast %66 : vector<32x1xf32> to vector<1x32x1xf32>
    tpu.vector_store %arg9[%c0_28, %c0_29, %c0_30], %69 {strides = array<i32>} : memref<2x32x1xf32, #tpu.memory_space<vmem>>, vector<1x32x1xf32>,
    %70 = vector.extract_strided_slice %33 {offsets = [0, 256], sizes = [32, 256], strides = [1, 1]} : vector<32x512xf32> to vector<32x256xf32>
    %cst_31 = arith.constant 0xFF800000 : f32
    %71 = vector.shape_cast %39 : vector<1x256xi1> to vector<1x256xi1>
    %72 = vector.broadcast %71 : vector<1x256xi1> to vector<32x256xi1>
    %73 = vector.broadcast %cst_31 : f32 to vector<32x256xf32>
    %74 = arith.select %72, %70, %73 : vector<32x256xi1>, vector<32x256xf32>
    %cst_32 = arith.constant dense<0xFF800000> : vector<32xf32>
    %75 = vector.multi_reduction <maximumf>, %74, %cst_32 [1] : vector<32x256xf32> to vector<32xf32>
    %76 = vector.shape_cast %75 : vector<32xf32> to vector<32x1xf32>
    %77 = vector.broadcast %76 : vector<32x1xf32> to vector<32x256xf32>
    %78 = arith.cmpf oge, %74, %77 : vector<32x256xf32>
    %c1073741824_i32_33 = arith.constant 1073741824 : i32
    %79 = vector.shape_cast %37 : vector<1x256xi32> to vector<1x256xi32>
    %80 = vector.broadcast %79 : vector<1x256xi32> to vector<32x256xi32>
    %81 = vector.broadcast %c1073741824_i32_33 : i32 to vector<32x256xi32>
    %82 = arith.select %78, %80, %81 : vector<32x256xi1>, vector<32x256xi32>
    %cst_34 = arith.constant dense<2147483647> : vector<32xi32>
    %83 = vector.multi_reduction <minsi>, %82, %cst_34 [1] : vector<32x256xi32> to vector<32xi32>
    %84 = vector.shape_cast %83 : vector<32xi32> to vector<32x1xi32>
    %c1 = arith.constant 1 : index
    %c0_35 = arith.constant 0 : index
    %c0_36 = arith.constant 0 : index
    %85 = vector.load %arg9[%c1, %c0_35, %c0_36] : memref<2x32x1xf32, #tpu.memory_space<vmem>>, vector<1x32x1xf32>
    %86 = vector.shape_cast %85 : vector<1x32x1xf32> to vector<32x1xf32>
    %87 = arith.cmpf ogt, %76, %86 : vector<32x1xf32>
    %c1_37 = arith.constant 1 : index
    %c0_38 = arith.constant 0 : index
    %c0_39 = arith.constant 0 : index
    %88 = vector.load %arg10[%c1_37, %c0_38, %c0_39] : memref<2x32x1xi32, #tpu.memory_space<vmem>>, vector<1x32x1xi32>
    %89 = vector.shape_cast %88 : vector<1x32x1xi32> to vector<32x1xi32>
    %90 = arith.select %87, %84, %89 : vector<32x1xi1>, vector<32x1xi32>
    %c1_40 = arith.constant 1 : index
    %c0_41 = arith.constant 0 : index
    %c0_42 = arith.constant 0 : index
    %91 = vector.load %arg10[%c1_40, %c0_41, %c0_42] : memref<2x32x1xi32, #tpu.memory_space<vmem>>, vector<1x32x1xi32>
    %92 = vector.shape_cast %91 : vector<1x32x1xi32> to vector<32x1xi32>
    %93 = vector.shape_cast %90 : vector<32x1xi32> to vector<1x32x1xi32>
    tpu.vector_store %arg10[%c1_40, %c0_41, %c0_42], %93 {strides = array<i32>} : memref<2x32x1xi32, #tpu.memory_space<vmem>>, vector<1x32x1xi32>,
    %c1_43 = arith.constant 1 : index
    %c0_44 = arith.constant 0 : index
    %c0_45 = arith.constant 0 : index
    %94 = vector.load %arg9[%c1_43, %c0_44, %c0_45] : memref<2x32x1xf32, #tpu.memory_space<vmem>>, vector<1x32x1xf32>
    %95 = vector.shape_cast %94 : vector<1x32x1xf32> to vector<32x1xf32>
    %96 = arith.select %87, %76, %95 : vector<32x1xi1>, vector<32x1xf32>
    %c1_46 = arith.constant 1 : index
    %c0_47 = arith.constant 0 : index
    %c0_48 = arith.constant 0 : index
    %97 = vector.load %arg9[%c1_46, %c0_47, %c0_48] : memref<2x32x1xf32, #tpu.memory_space<vmem>>, vector<1x32x1xf32>
    %98 = vector.shape_cast %97 : vector<1x32x1xf32> to vector<32x1xf32>
    %99 = vector.shape_cast %96 : vector<32x1xf32> to vector<1x32x1xf32>
    tpu.vector_store %arg9[%c1_46, %c0_47, %c0_48], %99 {strides = array<i32>} : memref<2x32x1xf32, #tpu.memory_space<vmem>>, vector<1x32x1xf32>,
    %c0_i32_49 = arith.constant 0 : i32
    %100 = arith.cmpi eq, %arg1, %c0_i32_49 : i32
    %101 = arith.extui %100 : i1 to i32
    %c0_i32_50 = arith.constant 0 : i32
    %102 = arith.cmpi ne, %101, %c0_i32_50 : i32
    scf.if %102 {
      %103 = tpu.iota {dimensions = array<i32: 0>} : vector<32x32xi32>
      %104 = tpu.iota {dimensions = array<i32: 1>} : vector<32x32xi32>
      %105 = arith.cmpi eq, %103, %104 : vector<32x32xi32>
      %c0_51 = arith.constant 0 : index
      %c0_52 = arith.constant 0 : index
      %c0_53 = arith.constant 0 : index
      %106 = vector.load %arg9[%c0_51, %c0_52, %c0_53] : memref<2x32x1xf32, #tpu.memory_space<vmem>>, vector<1x32x1xf32>
      %107 = vector.shape_cast %106 : vector<1x32x1xf32> to vector<32x1xf32>
      %cst_54 = arith.constant 0.000000e+00 : f32
      %108 = vector.shape_cast %107 : vector<32x1xf32> to vector<32x1xf32>
      %109 = vector.broadcast %108 : vector<32x1xf32> to vector<32x32xf32>
      %110 = vector.broadcast %cst_54 : f32 to vector<32x32xf32>
      %111 = arith.select %105, %109, %110 : vector<32x32xi1>, vector<32x32xf32>
      %cst_55 = arith.constant dense<0.000000e+00> : vector<32xf32>
      %112 = vector.multi_reduction <add>, %111, %cst_55 [0] : vector<32x32xf32> to vector<32xf32>
      %113 = vector.shape_cast %112 : vector<32xf32> to vector<1x32xf32>
      %c0_56 = arith.constant 0 : index
      %c0_57 = arith.constant 0 : index
      %c0_58 = arith.constant 0 : index
      %114 = vector.load %arg8[%c0_56, %c0_57, %c0_58] : memref<2x1x32xf32, #tpu.memory_space<vmem>>, vector<1x1x32xf32>
      %115 = vector.shape_cast %114 : vector<1x1x32xf32> to vector<1x32xf32>
      %116 = vector.shape_cast %113 : vector<1x32xf32> to vector<1x1x32xf32>
      tpu.vector_store %arg8[%c0_56, %c0_57, %c0_58], %116 {strides = array<i32>} : memref<2x1x32xf32, #tpu.memory_space<vmem>>, vector<1x1x32xf32>,
      %c0_59 = arith.constant 0 : index
      %c0_60 = arith.constant 0 : index
      %c0_61 = arith.constant 0 : index
      %117 = vector.load %arg10[%c0_59, %c0_60, %c0_61] : memref<2x32x1xi32, #tpu.memory_space<vmem>>, vector<1x32x1xi32>
      %118 = vector.shape_cast %117 : vector<1x32x1xi32> to vector<32x1xi32>
      %119 = arith.sitofp %118 : vector<32x1xi32> to vector<32x1xf32>
      %cst_62 = arith.constant 0.000000e+00 : f32
      %120 = vector.shape_cast %119 : vector<32x1xf32> to vector<32x1xf32>
      %121 = vector.broadcast %120 : vector<32x1xf32> to vector<32x32xf32>
      %122 = vector.broadcast %cst_62 : f32 to vector<32x32xf32>
      %123 = arith.select %105, %121, %122 : vector<32x32xi1>, vector<32x32xf32>
      %cst_63 = arith.constant dense<0.000000e+00> : vector<32xf32>
      %124 = vector.multi_reduction <add>, %123, %cst_63 [0] : vector<32x32xf32> to vector<32xf32>
      %125 = vector.shape_cast %124 : vector<32xf32> to vector<1x32xf32>
      %126 = arith.fptosi %125 : vector<1x32xf32> to vector<1x32xi32>
      %c0_64 = arith.constant 0 : index
      %c0_65 = arith.constant 0 : index
      %c0_66 = arith.constant 0 : index
      %127 = vector.load %arg7[%c0_64, %c0_65, %c0_66] : memref<2x1x32xi32, #tpu.memory_space<vmem>>, vector<1x1x32xi32>
      %128 = vector.shape_cast %127 : vector<1x1x32xi32> to vector<1x32xi32>
      %129 = vector.shape_cast %126 : vector<1x32xi32> to vector<1x1x32xi32>
      tpu.vector_store %arg7[%c0_64, %c0_65, %c0_66], %129 {strides = array<i32>} : memref<2x1x32xi32, #tpu.memory_space<vmem>>, vector<1x1x32xi32>,
      %c1_67 = arith.constant 1 : index
      %c0_68 = arith.constant 0 : index
      %c0_69 = arith.constant 0 : index
      %130 = vector.load %arg9[%c1_67, %c0_68, %c0_69] : memref<2x32x1xf32, #tpu.memory_space<vmem>>, vector<1x32x1xf32>
      %131 = vector.shape_cast %130 : vector<1x32x1xf32> to vector<32x1xf32>
      %cst_70 = arith.constant 0.000000e+00 : f32
      %132 = vector.shape_cast %131 : vector<32x1xf32> to vector<32x1xf32>
      %133 = vector.broadcast %132 : vector<32x1xf32> to vector<32x32xf32>
      %134 = vector.broadcast %cst_70 : f32 to vector<32x32xf32>
      %135 = arith.select %105, %133, %134 : vector<32x32xi1>, vector<32x32xf32>
      %cst_71 = arith.constant dense<0.000000e+00> : vector<32xf32>
      %136 = vector.multi_reduction <add>, %135, %cst_71 [0] : vector<32x32xf32> to vector<32xf32>
      %137 = vector.shape_cast %136 : vector<32xf32> to vector<1x32xf32>
      %c1_72 = arith.constant 1 : index
      %c0_73 = arith.constant 0 : index
      %c0_74 = arith.constant 0 : index
      %138 = vector.load %arg8[%c1_72, %c0_73, %c0_74] : memref<2x1x32xf32, #tpu.memory_space<vmem>>, vector<1x1x32xf32>
      %139 = vector.shape_cast %138 : vector<1x1x32xf32> to vector<1x32xf32>
      %140 = vector.shape_cast %137 : vector<1x32xf32> to vector<1x1x32xf32>
      tpu.vector_store %arg8[%c1_72, %c0_73, %c0_74], %140 {strides = array<i32>} : memref<2x1x32xf32, #tpu.memory_space<vmem>>, vector<1x1x32xf32>,
      %c1_75 = arith.constant 1 : index
      %c0_76 = arith.constant 0 : index
      %c0_77 = arith.constant 0 : index
      %141 = vector.load %arg10[%c1_75, %c0_76, %c0_77] : memref<2x32x1xi32, #tpu.memory_space<vmem>>, vector<1x32x1xi32>
      %142 = vector.shape_cast %141 : vector<1x32x1xi32> to vector<32x1xi32>
      %143 = arith.sitofp %142 : vector<32x1xi32> to vector<32x1xf32>
      %cst_78 = arith.constant 0.000000e+00 : f32
      %144 = vector.shape_cast %143 : vector<32x1xf32> to vector<32x1xf32>
      %145 = vector.broadcast %144 : vector<32x1xf32> to vector<32x32xf32>
      %146 = vector.broadcast %cst_78 : f32 to vector<32x32xf32>
      %147 = arith.select %105, %145, %146 : vector<32x32xi1>, vector<32x32xf32>
      %cst_79 = arith.constant dense<0.000000e+00> : vector<32xf32>
      %148 = vector.multi_reduction <add>, %147, %cst_79 [0] : vector<32x32xf32> to vector<32xf32>
      %149 = vector.shape_cast %148 : vector<32xf32> to vector<1x32xf32>
      %150 = arith.fptosi %149 : vector<1x32xf32> to vector<1x32xi32>
      %c1_80 = arith.constant 1 : index
      %c0_81 = arith.constant 0 : index
      %c0_82 = arith.constant 0 : index
      %151 = vector.load %arg7[%c1_80, %c0_81, %c0_82] : memref<2x1x32xi32, #tpu.memory_space<vmem>>, vector<1x1x32xi32>
      %152 = vector.shape_cast %151 : vector<1x1x32xi32> to vector<1x32xi32>
      %153 = vector.shape_cast %150 : vector<1x32xi32> to vector<1x1x32xi32>
      tpu.vector_store %arg7[%c1_80, %c0_81, %c0_82], %153 {strides = array<i32>} : memref<2x1x32xi32, #tpu.memory_space<vmem>>, vector<1x1x32xi32>,
    } else {
    }
    return
  }
  func.func @transform_0(%arg0: i32, %arg1: i32) -> (i32, i32, i32) {
    %c0_i32 = arith.constant 0 : i32
    %c0_i32_0 = arith.constant 0 : i32
    return %arg0, %c0_i32, %arg1 : i32, i32, i32
  }
  func.func @transform_1(%arg0: i32, %arg1: i32) -> (i32, i32) {
    %c0_i32 = arith.constant 0 : i32
    %c0_i32_0 = arith.constant 0 : i32
    %c0_i32_1 = arith.constant 0 : i32
    return %c0_i32, %c0_i32_0 : i32, i32
  }
  func.func @transform_2(%arg0: i32, %arg1: i32) -> (i32, i32) {
    %c0_i32 = arith.constant 0 : i32
    %c0_i32_0 = arith.constant 0 : i32
    %c0_i32_1 = arith.constant 0 : i32
    return %c0_i32, %c0_i32_0 : i32, i32
  }
  func.func @transform_3(%arg0: i32, %arg1: i32) -> (i32, i32) {
    %c0_i32 = arith.constant 0 : i32
    %c0_i32_0 = arith.constant 0 : i32
    %c0_i32_1 = arith.constant 0 : i32
    return %c0_i32, %c0_i32_0 : i32, i32
  }
  func.func @transform_4(%arg0: i32, %arg1: i32) -> (i32, i32) {
    %c0_i32 = arith.constant 0 : i32
    %c0_i32_0 = arith.constant 0 : i32
    %c0_i32_1 = arith.constant 0 : i32
    return %c0_i32, %c0_i32_0 : i32, i32
  }
  func.func @transform_5(%arg0: i32, %arg1: i32) -> (i32, i32, i32) {
    %c0_i32 = arith.constant 0 : i32
    %c0_i32_0 = arith.constant 0 : i32
    %c0_i32_1 = arith.constant 0 : i32
    return %arg0, %c0_i32, %c0_i32_0 : i32, i32, i32
  }
  func.func @transform_6(%arg0: i32, %arg1: i32) -> (i32, i32, i32) {
    %c0_i32 = arith.constant 0 : i32
    %c0_i32_0 = arith.constant 0 : i32
    %c0_i32_1 = arith.constant 0 : i32
    return %arg0, %c0_i32, %c0_i32_0 : i32, i32, i32
  }
}

</mosaic_0001>

<bundles_post_ra>
// kernel: pose_detector_forward.1
= control target key start
LH: loop header
LB: loop body
LE: loop exit
PB: predicated region body
PF: predicated region fallthrough
CT: control target
= control target key end

     0   :  { %v1625_v0 = vmov 2   ;;  %v1626_v1 = vmov 1   ;;  %v2731_v5 = vmov 0   ;;  %v2730_v41 = vlaneseq  ;;  %s2723_s1 = inlined_call_operand.vmem [shape: f32[128,3], index: 1, kind: input, shape index: {}]   ;;  %s2724_s2 = inlined_call_operand.vmem [shape: f32[128,1], index: 2, kind: input, shape index: {}]   ;;  %s2725_s4 = inlined_call_operand.vmem [shape: f32[32,1], index: 4, kind: input, shape index: {}]   ;;  %s2726_s0 = inlined_call_operand.vmem [shape: f32[1,3,512], index: 0, kind: input, shape index: {}]   ;;  %s2727_s3 = inlined_call_operand.vmem [shape: bf16[32,128], index: 3, kind: input, shape index: {}]   ;;  %s2728_s5 = inlined_call_operand.vmem [shape: s32[2,1,32], index: 5, kind: output, shape index: {0}]   ;;  %s2729_s6 = inlined_call_operand.vmem [shape: f32[2,1,32], index: 6, kind: output, shape index: {1}]  }
   0x1   :  { %1597 = vset.pattern.permute.xlu0 %v1625_v0  ;;  %1596 = vset.pattern.permute.xlu1 %v1626_v1  ;;  %v46_v2 = vld [vmem:[%s2723_s1] sm:$0xff]  ;;  %v48_v3 = vld [vmem:[%s2723_s1 + $0x10] sm:$0xff]  ;;  %v47_v4 = vld [vmem:[%s2723_s1 + $0x8] sm:$0xff]  ;;  %vm27_vm0 = vcmask 7168  }
   0x2   :  { %473 = vperm.xlu0 %1597, %v46_v2   ;;  %245 = vperm.xlu1 %1596, %v46_v2   ;;  %v51_v6 = vld [vmem:[%s2723_s1 + $0x28] sm:$0xff]  ;;  %v50_v7 = vld [vmem:[%s2723_s1 + $0x20] sm:$0xff]  ;;  %v53_v8 = vld [vmem:[%s2723_s1 + $0x38] sm:$0xff]  ;;  %v1816_v43 = vshrl.u32 %v2730_v41, 7 }
   0x3   :  { %1028 = vmatprep.mubr.bf16.mxu0 %v2731_v5  ;;  %1081 = vmatprep.mubr.bf16.mxu1 %v2731_v5  ;;  %v1693_v9 = vld [vmem:[%s2723_s1 + $0x48] sm:$0xff]  ;;  %v49_v10 = vld [vmem:[%s2723_s1 + $0x18] sm:$0xff]  ;;  %v700_v14 = vld [vmem:[%s2724_s2] sm:$0xff] }
   0x4   :  { %v1702_v11 = vld [vmem:[%s2723_s1 + $0x58] sm:$0xff]  ;;  %v1708_v12 = vld [vmem:[%s2723_s1 + $0x68] sm:$0xff]  ;;  %v52_v16 = vld [vmem:[%s2723_s1 + $0x30] sm:$0xff]  ;;  %2748 = vst [vmem:[#allocation7_spill] sm:$0xff] %v1816_v43  ;;  %v310_v47 = vsub.s32 1, %v1816_v43  ;;  %v314_v51 = vsub.s32 5, %v1816_v43 }
   0x5   :  { %v1715_v13 = vld [vmem:[%s2723_s1 + $0x78] sm:$0xff]  ;;  %v701_v15 = vld [vmem:[%s2724_s2 + $0x8] sm:$0xff]  ;;  %v702_v17 = vld [vmem:[%s2724_s2 + $0x10] sm:$0xff]  ;;  %v538_v52 = vsub.s32 2, %v1816_v43  ;;  %v542_v53 = vsub.s32 6, %v1816_v43  ;;  %v146_v55 = vsub.s32 0, %v1816_v43 }
   0x6   :  { %481 = vperm.xlu0 %1597, %v48_v3   ;;  %249 = vperm.xlu1 %1596, %v47_v4   ;;  %v704_v18 = vld [vmem:[%s2724_s2 + $0x20] sm:$0xff]  ;;  %v703_v19 = vld [vmem:[%s2724_s2 + $0x18] sm:$0xff]  ;;  %v706_v20 = vld [vmem:[%s2724_s2 + $0x30] sm:$0xff]  ;;  %v150_v56 = vsub.s32 4, %v1816_v43 }
   0x7   :  { %v708_v21 = vld [vmem:[%s2724_s2 + $0x40] sm:$0xff]  ;;  %v710_v22 = vld [vmem:[%s2724_s2 + $0x50] sm:$0xff]  ;;  %v705_v23 = vld [vmem:[%s2724_s2 + $0x28] sm:$0xff] }
   0x8   :  { %v54_v24 = vld [vmem:[%s2723_s1 + $0x40] sm:$0xff]  ;;  %v715_v26 = vld [vmem:[%s2724_s2 + $0x78] sm:$0xff]  ;;  %v961_v27 = vld [vmem:[%s2725_s4 + $0x8] sm:$0xff] }
   0x9   :  { %v712_v25 = vld [vmem:[%s2724_s2 + $0x60] sm:$0xff]  ;;  %v963_v28 = vld [vmem:[%s2725_s4 + $0x18] sm:$0xff]  ;;  %v56_v30 = vld [vmem:[%s2723_s1 + $0x50] sm:$0xff] }
   0xa   :  { %493 = vperm.xlu0 %1597, %v51_v6   ;;  %1598 = vset.pattern.permute.xlu1 %v1625_v0  ;;  %v707_v29 = vld [vmem:[%s2724_s2 + $0x38] sm:$0xff]  ;;  %v709_v31 = vld [vmem:[%s2724_s2 + $0x48] sm:$0xff]  ;;  %v58_v34 = vld [vmem:[%s2723_s1 + $0x60] sm:$0xff] }
   0xb   :  { %477 = vperm.xlu1 %1598, %v47_v4   ;;  %v711_v46 = vld [vmem:[%s2724_s2 + $0x58] sm:$0xff]  ;;  %v44_v49 = vld [vmem:[%s2726_s0] sm:$0x77]  ;;  %v45_v50 = vld [vmem:[%s2726_s0 + $0x8] sm:$0x77] }
   0xc   :  { %v60_v57 = vld [vmem:[%s2723_s1 + $0x70] sm:$0xff]  ;;  %v311_v58 = vrot.slane %v44_v49, %v310_v47  ;;  %v319_v59 = vrot.slane %v45_v50, %v310_v47  ;;  %v315_v60 = vrot.slane %v44_v49, %v314_v51  ;;  %v323_v61 = vrot.slane %v45_v50, %v314_v51 }
   0xd   :  { %v539_v63 = vrot.slane %v44_v49, %v538_v52 }
   0xe   :  { %1605 = vset.pattern.permute.xlu0 %v1626_v1 }
   0xf   :  { %261 = vperm.xlu0 %1605, %v50_v7   ;;  %1599 = vset.pattern.permute.xlu1 %v2731_v5 }
  0x10   :  { %74 = vperm.xlu1 %1599, %v48_v3  }
  0x13   :  { %273 = vperm.xlu0 %1605, %v53_v8  }
  0x14   :  { %1600 = vset.pattern.permute.xlu1 %v1626_v1 }
  0x15   :  { %253 = vperm.xlu1 %1600, %v48_v3   ;;  %v547_v3 = vrot.slane %v45_v50, %v538_v52 }
  0x17   :  { %281 = vperm.xlu0 %1605, %v1693_v9  }
  0x19   :  { %257 = vperm.xlu1 %1600, %v49_v10  }
  0x1b   :  { %289 = vperm.xlu0 %1605, %v1702_v11  }
  0x1d   :  { %1601 = vset.pattern.permute.xlu1 %v1625_v0 }
  0x1e   :  { %485 = vperm.xlu1 %1601, %v49_v10  }
  0x1f   :  { %297 = vperm.xlu0 %1605, %v1708_v12  }
  0x22   :  { %1602 = vset.pattern.permute.xlu1 %v2731_v5 }
  0x23   :  { %305 = vperm.xlu0 %1605, %v1715_v13   ;;  %718 = vperm.xlu1 %1602, %v700_v14   ;;  %v1854_v14 = vrot.slane %v315_v60, %v310_v47 }
  0x27   :  { %1620 = vset.pattern.permute.xlu0 %v2731_v5  ;;  %84 = vperm.xlu1 %1602, %v50_v7  }
  0x28   :  { %64 = vperm.xlu0 %1620, %v46_v2   ;;  %v543_v2 = vrot.slane %v44_v49, %v542_v53 }
  0x2b   :  { %89 = vperm.xlu1 %1602, %v51_v6  }
  0x2c   :  { %69 = vperm.xlu0 %1620, %v47_v4   ;;  %v551_v4 = vrot.slane %v45_v50, %v542_v53 }
  0x2f   :  { %1603 = vset.pattern.permute.xlu1 %v1626_v1 }
  0x30   :  { %79 = vperm.xlu0 %1620, %v49_v10   ;;  %265 = vperm.xlu1 %1603, %v51_v6   ;;  %v159_v10 = vrot.slane %v45_v50, %v150_v56 }
  0x34   :  { %723 = vperm.xlu0 %1620, %v701_v15   ;;  %1604 = vset.pattern.permute.xlu1 %v1625_v0  ;;  %v1856_v15 = vrot.slane %v323_v61, %v310_v47 }
  0x35   :  { %489 = vperm.xlu1 %1604, %v50_v7   ;;  %v147_v7 = vrot.slane %v44_v49, %v146_v55 }
  0x38   :  { %94 = vperm.xlu0 %1620, %v52_v16  }
  0x39   :  { %1606 = vset.pattern.permute.xlu1 %v2731_v5 }
  0x3a   :  { %728 = vperm.xlu1 %1606, %v702_v17   ;;  %v1860_v17 = vrot.slane %v543_v2, %v538_v52 }
  0x3c   :  { %738 = vperm.xlu0 %1620, %v704_v18   ;;  %v1862_v18 = vrot.slane %v547_v3, %v538_v52 }
  0x3e   :  { %733 = vperm.xlu1 %1606, %v703_v19   ;;  %v1864_v19 = vrot.slane %v551_v4, %v538_v52 }
  0x40   :  { %109 = vperm.xlu0 %1620, %v1693_v9  }
  0x42   :  { %99 = vperm.xlu1 %1606, %v53_v8  }
  0x44   :  { %748 = vperm.xlu0 %1620, %v706_v20  }
  0x46   :  { %1607 = vset.pattern.permute.xlu1 %v1626_v1 }
  0x47   :  { %269 = vperm.xlu1 %1607, %v52_v16  }
  0x48   :  { %119 = vperm.xlu0 %1620, %v1702_v11  }
  0x4b   :  { %1608 = vset.pattern.permute.xlu1 %v1625_v0 }
  0x4c   :  { %497 = vperm.xlu1 %1608, %v52_v16   ;;  %758 = vperm.xlu0 %1620, %v708_v21   ;;  %v1858_v16 = vrot.slane %v539_v63, %v538_v52 }
  0x50   :  { %501 = vperm.xlu1 %1608, %v53_v8   ;;  %129 = vperm.xlu0 %1620, %v1708_v12   ;;  %v151_v8 = vrot.slane %v44_v49, %v150_v56 }
  0x54   :  { %1609 = vset.pattern.permute.xlu1 %v2731_v5  ;;  %768 = vperm.xlu0 %1620, %v710_v22   ;;  %v1871_v22 = vrot.slane %v147_v7, %v146_v55 }
  0x55   :  { %743 = vperm.xlu1 %1609, %v705_v23   ;;  %v1873_v23 = vrot.slane %v151_v8, %v146_v55 }
  0x58   :  { %139 = vperm.xlu0 %1620, %v1715_v13  }
  0x59   :  { %104 = vperm.xlu1 %1609, %v54_v24  }
  0x5c   :  { %778 = vperm.xlu0 %1620, %v712_v25   ;;  %v1877_v25 = vrot.slane %v159_v10, %v146_v55 }
  0x5d   :  { %1610 = vset.pattern.permute.xlu1 %v1626_v1 }
  0x5e   :  { %277 = vperm.xlu1 %1610, %v54_v24  }
  0x60   :  { %793 = vperm.xlu0 %1620, %v715_v26  }
  0x62   :  { %1611 = vset.pattern.permute.xlu1 %v1625_v0 }
  0x63   :  { %505 = vperm.xlu1 %1611, %v54_v24  }
  0x64   :  { %971 = vperm.xlu0 %1620, %v961_v27  }
  0x67   :  { %509 = vperm.xlu1 %1611, %v1693_v9   ;;  %v155_v9 = vrot.slane %v45_v50, %v146_v55 }
  0x68   :  { %981 = vperm.xlu0 %1620, %v963_v28  }
  0x69   :  { %v1875_v24 = vrot.slane %v155_v9, %v146_v55 }
  0x6b   :  { %1612 = vset.pattern.permute.xlu1 %v2731_v5 }
  0x6c   :  { %753 = vperm.xlu1 %1612, %v707_v29  }
  0x70   :  { %114 = vperm.xlu1 %1612, %v56_v30  }
  0x74   :  { %1613 = vset.pattern.permute.xlu1 %v1626_v1 }
  0x75   :  { %285 = vperm.xlu1 %1613, %v56_v30  }
  0x79   :  { %1614 = vset.pattern.permute.xlu1 %v1625_v0 }
  0x7a   :  { %513 = vperm.xlu1 %1614, %v56_v30  }
  0x7e   :  { %517 = vperm.xlu1 %1614, %v1702_v11   ;;  %v1850_v11 = vrot.slane %v311_v58, %v310_v47 }
  0x81   :  { %v1791_v32 = vpop.permute.xlu1 %245  ;;  %v1793_v33 = vpop.permute.xlu0 %473 }
  0x82   :  { %1615 = vset.pattern.permute.xlu1 %v2731_v5  ;;  %v344_v26 = vmul.f32 %v1850_v11, %v1791_v32  ;;  %v573_v28 = vmul.f32 %v1860_v17, %v1793_v33  ;;  %v574_v29 = vmul.f32 %v1862_v18, %v1793_v33  ;;  %v575_v30 = vmul.f32 %v1864_v19, %v1793_v33 }
  0x83   :  { %763 = vperm.xlu1 %1615, %v709_v31   ;;  %v345_v31 = vmul.f32 %v1854_v14, %v1791_v32 }
  0x85   :  { %v1799_v35 = vpop.permute.xlu1 %249  ;;  %v1801_v36 = vpop.permute.xlu0 %481 }
  0x86   :  { %v1901_v49 = vmul.f32 %v1858_v16, %v1801_v36  ;;  %v1905_v50 = vmul.f32 %v1860_v17, %v1801_v36  ;;  %v1911_v51 = vmul.f32 %v1862_v18, %v1801_v36  ;;  %v349_v53 = vmul.f32 %v1854_v14, %v1799_v35 }
  0x87   :  { %124 = vperm.xlu1 %1615, %v58_v34   ;;  %v351_v55 = vmul.f32 %v1856_v15, %v1799_v35 }
  0x89   :  { %v1803_v37 = vpop.permute.xlu0 %493 }
  0x8a   :  { %2745 = vst [vmem:[#allocation4_spill] sm:$0xff] %v1803_v37  ;;  %v1805_v38 = vpop.permute.xlu1 %477 }
  0x8b   :  { %1616 = vset.pattern.permute.xlu1 %v1626_v1  ;;  %v576_v61 = vmul.f32 %v1858_v16, %v1805_v38 }
  0x8c   :  { %293 = vperm.xlu1 %1616, %v58_v34  }
  0x8e   :  { %v1808_v39 = vpop.permute.xlu0 %261 }
  0x8f   :  { %2746 = vst [vmem:[#allocation5_spill] sm:$0xff] %v1808_v39  ;;  %v1810_v40 = vpop.permute.xlu1 %74 }
  0x90   :  { %1617 = vset.pattern.permute.xlu1 %v1625_v0 }
  0x91   :  { %521 = vperm.xlu1 %1617, %v58_v34   ;;  %v347_v34 = vmul.f32 %v1856_v15, %v1791_v32 }
  0x92   :  { %v1813_v42 = vpop.permute.xlu0 %273 }
  0x93   :  { %2747 = vst [vmem:[#allocation6_spill] sm:$0xff] %v1813_v42 }
  0x94   :  { %v1818_v44 = vpop.permute.xlu1 %253 }
  0x95   :  { %525 = vperm.xlu1 %1617, %v1708_v12   ;;  %v1852_v12 = vrot.slane %v319_v59, %v310_v47  ;;  %v353_v8 = vmul.f32 %v1854_v14, %v1818_v44  ;;  %v355_v10 = vmul.f32 %v1856_v15, %v1818_v44 }
  0x96   :  { %v1821_v45 = vpop.permute.xlu0 %281 }
  0x97   :  { %2749 = vst [vmem:[#allocation8_spill] sm:$0xff] %v1821_v45  ;;  %v346_v27 = vmul.f32 %v1852_v12, %v1791_v32  ;;  %v350_v47 = vmul.f32 %v1852_v12, %v1799_v35  ;;  %v1915_v32 = vmul.f32 %v1864_v19, %v1801_v36  ;;  %v577_v36 = vmul.f32 %v1860_v17, %v1805_v38 }
  0x98   :  { %v1827_v48 = vpop.permute.xlu1 %257  ;;  %v354_v9 = vmul.f32 %v1852_v12, %v1818_v44 }
  0x99   :  { %1618 = vset.pattern.permute.xlu1 %v2731_v5  ;;  %v356_v37 = vmul.f32 %v1850_v11, %v1827_v48 }
  0x9a   :  { %773 = vperm.xlu1 %1618, %v711_v46   ;;  %v1839_v54 = vpop.permute.xlu0 %289  ;;  %v348_v46 = vmul.f32 %v1850_v11, %v1799_v35  ;;  %v578_v35 = vmul.f32 %v1862_v18, %v1805_v38 }
  0x9b   :  { %2750 = vst [vmem:[#allocation9_spill] sm:$0xff] %v1839_v54 }
  0x9d   :  { %v1846_v62 = vpop.permute.xlu1 %485 }
  0x9e   :  { %134 = vperm.xlu1 %1618, %v60_v57   ;;  %v1848_v6 = vpop.permute.xlu0 %297 }
  0x9f   :  { %2751 = vst [vmem:[#allocation10_spill] sm:$0xff] %v1848_v6 }
  0xa2   :  { %1619 = vset.pattern.permute.xlu1 %v1626_v1  ;;  %v1867_v20 = vpop.permute.xlu1 %718  ;;  %v1869_v21 = vpop.permute.xlu0 %305  ;;  %v572_v1 = vmul.f32 %v1858_v16, %v1793_v33 }
  0xa3   :  { %2752 = vst [vmem:[#allocation11_spill] sm:$0xff] %v1869_v21  ;;  %301 = vperm.xlu1 %1619, %v60_v57  }
  0xa6   :  { %v1907_v33 = vpop.permute.xlu1 %84 }
  0xa7   :  { %2753 = vst [vmem:[#allocation12_spill] sm:$0xff] %v1907_v33  ;;  %v65_v52 = vpop.permute.xlu0 %64  ;;  %1621 = vset.pattern.permute.xlu1 %v1625_v0  ;;  %v579_v0 = vmul.f32 %v1864_v19, %v1805_v38  ;;  %v2755_v33 = vmov 0  }
  0xa8   :  { %v180_v56 = vmul.f32 %v1871_v22, %v65_v52  ;;  %v181_v58 = vmul.f32 %v1873_v23, %v65_v52  ;;  %v182_v59 = vmul.f32 %v1875_v24, %v65_v52  ;;  %v183_v60 = vmul.f32 %v1877_v25, %v65_v52  ;;  %529 = vperm.xlu1 %1621, %v60_v57  }
  0xa9   :  { %v352_v57 = vmul.f32 %v1850_v11, %v1818_v44  ;;  %v190_v44 = vmul.f32 %v1875_v24, %v1810_v40  ;;  %36 = vst.msk [vmem:[#allocation3] sm:$0xff] %vm27_vm0, %v2755_v33  ;;  %37 = vst.msk [vmem:[#allocation3 + $0x8] sm:$0xff] %vm27_vm0, %v2755_v33 }
  0xaa   :  { %v408_v63 = vadd.f32 %v344_v26, %v180_v56  ;;  %v410_v2 = vadd.f32 %v346_v27, %v182_v59  ;;  %v1934_v3 = vpop.permute.xlu1 %89  ;;  %v409_v4 = vadd.f32 %v345_v31, %v181_v58  ;;  %v411_v7 = vadd.f32 %v347_v34, %v183_v60  ;;  %v713_v59 = vld [vmem:[%s2724_s2 + $0x68] sm:$0xff]  ;;  %38 = vst.msk [vmem:[#allocation3 + $0x10] sm:$0xff] %vm27_vm0, %v2755_v33 }
  0xab   :  { %2754 = vst [vmem:[#allocation13_spill] sm:$0xff] %v1934_v3  ;;  %v70_v52 = vpop.permute.xlu0 %69  ;;  %v188_v34 = vmul.f32 %v1871_v22, %v1810_v40  ;;  %v189_v56 = vmul.f32 %v1873_v23, %v1810_v40  ;;  %v191_v58 = vmul.f32 %v1877_v25, %v1810_v40  ;;  %v418_v45 = vadd.f32 %v354_v9, %v190_v44 }
  0xac   :  { %v184_v38 = vmul.f32 %v1871_v22, %v70_v52  ;;  %v185_v26 = vmul.f32 %v1873_v23, %v70_v52  ;;  %v186_v27 = vmul.f32 %v1875_v24, %v70_v52  ;;  %v187_v31 = vmul.f32 %v1877_v25, %v70_v52  ;;  %533 = vperm.xlu1 %1621, %v1715_v13  }
  0xad   :  { %v637_v60 = vadd.f32 %v573_v28, %v409_v4  ;;  %v639_v52 = vadd.f32 %v575_v30, %v411_v7  ;;  %v636_v41 = vadd.f32 %v572_v1, %v408_v63  ;;  %v638_v13 = vadd.f32 %v574_v29, %v410_v2  ;;  %v714_v30 = vld [vmem:[%s2724_s2 + $0x70] sm:$0xff]  ;;  %39 = vst.msk [vmem:[#allocation3 + $0x18] sm:$0xff] %vm27_vm0, %v2755_v33 }
  0xae   :  { %v417_v21 = vadd.f32 %v353_v8, %v189_v56  ;;  %v419_v6 = vadd.f32 %v355_v10, %v191_v58  ;;  %v416_v54 = vadd.f32 %v352_v57, %v188_v34  ;;  %v412_v42 = vadd.f32 %v348_v46, %v184_v38  ;;  %40 = vst.msk [vmem:[#allocation3 + $0x20] sm:$0xff] %vm27_vm0, %v2755_v33 }
  0xaf   :  { %v80_v5 = vpop.permute.xlu0 %79  ;;  %v1960_v43 = vpop.permute.xlu1 %265  ;;  %v414_v3 = vadd.f32 %v350_v47, %v186_v27  ;;  %v413_v40 = vadd.f32 %v349_v53, %v185_v26  ;;  %v415_v39 = vadd.f32 %v351_v55, %v187_v31  ;;  %v357_v1 = vmul.f32 %v1854_v14, %v1827_v48  ;;  %41 = vst.msk [vmem:[#allocation3 + $0x28] sm:$0xff] %vm27_vm0, %v2755_v33 }
  0xb0   :  { %1622 = vset.pattern.permute.xlu1 %v2755_v33  ;;  %v358_v28 = vmul.f32 %v1852_v12, %v1827_v48  ;;  %v359_v29 = vmul.f32 %v1856_v15, %v1827_v48  ;;  %v797_v46 = vadd.f32 %v1867_v20, %v637_v60  ;;  %v799_v47 = vadd.f32 %v1867_v20, %v639_v52 }
  0xb1   :  { %783 = vperm.xlu1 %1622, %v713_v59   ;;  %v796_v53 = vadd.f32 %v1867_v20, %v636_v41  ;;  %v798_v55 = vadd.f32 %v1867_v20, %v638_v13  ;;  %v192_v63 = vmul.f32 %v1871_v22, %v80_v5  ;;  %v193_v2 = vmul.f32 %v1873_v23, %v80_v5 }
  0xb2   :  { %v194_v4 = vmul.f32 %v1875_v24, %v80_v5  ;;  %v195_v48 = vmul.f32 %v1877_v25, %v80_v5  ;;  %v641_v8 = vadd.f32 %v577_v36, %v413_v40  ;;  %v643_v9 = vadd.f32 %v579_v0, %v415_v39  ;;  %v960_v5 = vld [vmem:[%s2725_s4] sm:$0xff]  ;;  %v962_v40 = vld [vmem:[%s2725_s4 + $0x10] sm:$0xff]  ;;  %42 = vst.msk [vmem:[#allocation3 + $0x30] sm:$0xff] %vm27_vm0, %v2755_v33 }
  0xb3   :  { %v724_v7 = vpop.permute.xlu0 %723  ;;  %v640_v10 = vadd.f32 %v576_v61, %v412_v42  ;;  %v642_v38 = vadd.f32 %v578_v35, %v414_v3  ;;  %v645_v41 = vadd.f32 %v1905_v50, %v417_v21  ;;  %v647_v20 = vadd.f32 %v1915_v32, %v419_v6  ;;  %43 = vst.msk [vmem:[#allocation3 + $0x38] sm:$0xff] %vm27_vm0, %v2755_v33 }
  0xb4   :  { %v1982_v57 = vpop.permute.xlu1 %489  ;;  %v644_v26 = vadd.f32 %v1901_v49, %v416_v54  ;;  %v646_v27 = vadd.f32 %v1911_v51, %v418_v45  ;;  %v801_v31 = vadd.f32 %v724_v7, %v641_v8  ;;  %v803_v34 = vadd.f32 %v724_v7, %v643_v9 }
  0xb5   :  { %788 = vperm.xlu1 %1622, %v714_v30   ;;  %v800_v56 = vadd.f32 %v724_v7, %v640_v10  ;;  %v802_v36 = vadd.f32 %v724_v7, %v642_v38  ;;  %v420_v39 = vadd.f32 %v356_v37, %v192_v63  ;;  %v421_v42 = vadd.f32 %v357_v1, %v193_v2 }
  0xb6   :  { %v422_v0 = vadd.f32 %v358_v28, %v194_v4  ;;  %v423_v61 = vadd.f32 %v359_v29, %v195_v48  ;;  %v861_v35 = vmax.f32 %v797_v46, 0.0  ;;  %v863_v21 = vmax.f32 %v799_v47, 0.0 }
  0xb7   :  { %v860_v50 = vmax.f32 %v796_v53, 0.0  ;;  %v862_v6 = vmax.f32 %v798_v55, 0.0  ;;  %v865_v49 = vmax.f32 %v801_v31, 0.0  ;;  %v867_v45 = vmax.f32 %v803_v34, 0.0 }
  0xb8   :  { %v864_v51 = vmax.f32 %v800_v56, 0.0  ;;  %v866_v32 = vmax.f32 %v802_v36, 0.0  ;;  %v584_v3 = vmul.f32 %v1858_v16, %v1846_v62  ;;  %v585_v44 = vmul.f32 %v1860_v17, %v1846_v62 }
  0xb9   :  { %966 = vperm.xlu1 %1622, %v960_v5   ;;  %v729_v54 = vpop.permute.xlu1 %728  ;;  %v586_v37 = vmul.f32 %v1862_v18, %v1846_v62  ;;  %v587_v58 = vmul.f32 %v1864_v19, %v1846_v62  ;;  %v925_v59 = vpack.c.bf16 %v865_v49, %v861_v35  ;;  %v927_v60 = vpack.c.bf16 %v867_v45, %v863_v21  ;;  %v2757_v21 = vld [vmem:[#allocation5_spill] sm:$0xff] }
  0xba   :  { %v924_v52 = vpack.c.bf16 %v864_v51, %v860_v50  ;;  %v926_v13 = vpack.c.bf16 %v866_v32, %v862_v6  ;;  %v648_v1 = vadd.f32 %v584_v3, %v420_v39  ;;  %v649_v28 = vadd.f32 %v585_v44, %v421_v42  ;;  %v2756_v42 = vld [vmem:[#allocation4_spill] sm:$0xff]  ;;  %v95_v44 = vpop.permute.xlu0 %94 }
  0xbb   :  { %v650_v29 = vadd.f32 %v586_v37, %v422_v0  ;;  %v651_v30 = vadd.f32 %v587_v58, %v423_v61  ;;  %996 = vmatprep.subr.bf16.mxu0 %v925_v59  ;;  %1049 = vmatprep.subr.bf16.mxu1 %v927_v60  ;;  %v805_v47 = vadd.f32 %v729_v54, %v645_v41  ;;  %v2758_v58 = vld [vmem:[#allocation12_spill] sm:$0xff] }
  0xbc   :  { %v807_v53 = vadd.f32 %v729_v54, %v647_v20  ;;  %v804_v55 = vadd.f32 %v729_v54, %v644_v26  ;;  %997 = vmatpush1.bf16.msra.mxu0 %v924_v52  ;;  %1050 = vmatpush1.bf16.msra.mxu1 %v926_v13  ;;  %v806_v38 = vadd.f32 %v729_v54, %v646_v27 }
  0xbd   :  { %v734_v46 = vpop.permute.xlu1 %733  ;;  %976 = vperm.xlu1 %1622, %v962_v40   ;;  %v869_v48 = vmax.f32 %v805_v47, 0.0  ;;  %v592_v0 = vmul.f32 %v1858_v16, %v2756_v42  ;;  %v593_v27 = vmul.f32 %v1860_v17, %v2756_v42  ;;  %v594_v61 = vmul.f32 %v1862_v18, %v2756_v42  ;;  %v2759_v40 = vld [vmem:[#allocation13_spill] sm:$0xff] }
  0xbe   :  { %v808_v62 = vadd.f32 %v734_v46, %v648_v1  ;;  %v809_v63 = vadd.f32 %v734_v46, %v649_v28  ;;  %v810_v2 = vadd.f32 %v734_v46, %v650_v29  ;;  %v811_v4 = vadd.f32 %v734_v46, %v651_v30 }
  0xbf   :  { %v871_v7 = vmax.f32 %v807_v53, 0.0  ;;  %v868_v9 = vmax.f32 %v804_v55, 0.0  ;;  %v870_v56 = vmax.f32 %v806_v38, 0.0  ;;  %v595_v35 = vmul.f32 %v1864_v19, %v2756_v42 }
  0xc0   :  { %v873_v8 = vmax.f32 %v809_v63, 0.0  ;;  %v872_v10 = vmax.f32 %v808_v62, 0.0  ;;  %v875_v31 = vmax.f32 %v811_v4, 0.0  ;;  %v874_v34 = vmax.f32 %v810_v2, 0.0 }
  0xc1   :  { %v2002_v5 = vpop.permute.xlu1 %99  ;;  %v360_v50 = vmul.f32 %v1850_v11, %v2757_v21  ;;  %v361_v6 = vmul.f32 %v1854_v14, %v2757_v21  ;;  %v362_v54 = vmul.f32 %v1852_v12, %v2757_v21  ;;  %v363_v49 = vmul.f32 %v1856_v15, %v2757_v21 }
  0xc2   :  { %v929_v41 = vpack.c.bf16 %v873_v8, %v869_v48  ;;  %v931_v20 = vpack.c.bf16 %v875_v31, %v871_v7  ;;  %v928_v26 = vpack.c.bf16 %v872_v10, %v868_v9  ;;  %v930_v36 = vpack.c.bf16 %v874_v34, %v870_v56  ;;  %v739_v10 = vpop.permute.xlu0 %738 }
  0xc3   :  { %v364_v45 = vmul.f32 %v1850_v11, %v1960_v43  ;;  %v365_v51 = vmul.f32 %v1854_v14, %v1960_v43  ;;  %v366_v32 = vmul.f32 %v1852_v12, %v1960_v43  ;;  %v367_v3 = vmul.f32 %v1856_v15, %v1960_v43 }
  0xc4   :  { %998 = vmatprep.subr.bf16.mxu0 %v929_v41  ;;  %1051 = vmatprep.subr.bf16.mxu1 %v931_v20  ;;  %v196_v59 = vmul.f32 %v1871_v22, %v2758_v58  ;;  %v197_v60 = vmul.f32 %v1873_v23, %v2758_v58  ;;  %v198_v52 = vmul.f32 %v1875_v24, %v2758_v58 }
  0xc5   :  { %999 = vmatpush1.bf16.msra.mxu0 %v928_v26  ;;  %1052 = vmatpush1.bf16.msra.mxu1 %v930_v36  ;;  %v199_v13 = vmul.f32 %v1877_v25, %v2758_v58  ;;  %v200_v1 = vmul.f32 %v1871_v22, %v2759_v40  ;;  %v201_v43 = vmul.f32 %v1873_v23, %v2759_v40 }
  0xc6   :  { %v2004_v39 = vpop.permute.xlu1 %269  ;;  %v202_v28 = vmul.f32 %v1875_v24, %v2759_v40  ;;  %v203_v29 = vmul.f32 %v1877_v25, %v2759_v40  ;;  %v588_v30 = vmul.f32 %v1858_v16, %v1982_v57  ;;  %v589_v46 = vmul.f32 %v1860_v17, %v1982_v57 }
  0xc7   :  { %v590_v47 = vmul.f32 %v1862_v18, %v1982_v57  ;;  %v591_v53 = vmul.f32 %v1864_v19, %v1982_v57  ;;  %v428_v62 = vadd.f32 %v364_v45, %v200_v1  ;;  %v429_v63 = vadd.f32 %v365_v51, %v201_v43 }
  0xc8   :  { %v430_v2 = vadd.f32 %v366_v32, %v202_v28  ;;  %v431_v4 = vadd.f32 %v367_v3, %v203_v29  ;;  %v424_v48 = vadd.f32 %v360_v50, %v196_v59  ;;  %v425_v7 = vadd.f32 %v361_v6, %v197_v60 }
  0xc9   :  { %v426_v8 = vadd.f32 %v362_v54, %v198_v52  ;;  %v427_v9 = vadd.f32 %v363_v49, %v199_v13  ;;  %v656_v20 = vadd.f32 %v592_v0, %v428_v62  ;;  %v657_v26 = vadd.f32 %v593_v27, %v429_v63 }
  0xca   :  { %v652_v38 = vadd.f32 %v588_v30, %v424_v48  ;;  %v653_v31 = vadd.f32 %v589_v46, %v425_v7  ;;  %v658_v56 = vadd.f32 %v594_v61, %v430_v2  ;;  %v659_v36 = vadd.f32 %v595_v35, %v431_v4  ;;  %v2760_v2 = vld [vmem:[#allocation6_spill] sm:$0xff] }
  0xcb   :  { %v2030_v37 = vpop.permute.xlu1 %497  ;;  %v654_v34 = vadd.f32 %v590_v47, %v426_v8  ;;  %v655_v41 = vadd.f32 %v591_v53, %v427_v9  ;;  %v204_v28 = vmul.f32 %v1871_v22, %v95_v44  ;;  %v205_v29 = vmul.f32 %v1873_v23, %v95_v44  ;;  %v2082_v8 = vpop.permute.xlu0 %109 }
  0xcc   :  { %v812_v57 = vadd.f32 %v739_v10, %v652_v38  ;;  %v813_v42 = vadd.f32 %v739_v10, %v653_v31  ;;  %v206_v30 = vmul.f32 %v1875_v24, %v95_v44  ;;  %v207_v46 = vmul.f32 %v1877_v25, %v95_v44 }
  0xcd   :  { %v814_v21 = vadd.f32 %v739_v10, %v654_v34  ;;  %v815_v45 = vadd.f32 %v739_v10, %v655_v41  ;;  %v368_v47 = vmul.f32 %v1850_v11, %v2004_v39  ;;  %v369_v53 = vmul.f32 %v1854_v14, %v2004_v39 }
  0xce   :  { %v877_v52 = vmax.f32 %v813_v42, 0.0  ;;  %v876_v27 = vmax.f32 %v812_v57, 0.0  ;;  %v370_v62 = vmul.f32 %v1852_v12, %v2004_v39  ;;  %v371_v63 = vmul.f32 %v1856_v15, %v2004_v39 }
  0xcf   :  { %v2056_v55 = vpop.permute.xlu1 %501  ;;  %v879_v0 = vmax.f32 %v815_v45, 0.0  ;;  %v878_v61 = vmax.f32 %v814_v21, 0.0  ;;  %v372_v4 = vmul.f32 %v1850_v11, %v2760_v2  ;;  %v373_v48 = vmul.f32 %v1854_v14, %v2760_v2 }
  0xd0   :  { %v374_v44 = vmul.f32 %v1852_v12, %v2760_v2  ;;  %v375_v7 = vmul.f32 %v1856_v15, %v2760_v2  ;;  %v596_v10 = vmul.f32 %v1858_v16, %v2030_v37  ;;  %v597_v39 = vmul.f32 %v1860_v17, %v2030_v37 }
  0xd1   :  { %v598_v38 = vmul.f32 %v1862_v18, %v2030_v37  ;;  %v599_v31 = vmul.f32 %v1864_v19, %v2030_v37  ;;  %v208_v34 = vmul.f32 %v1871_v22, %v2002_v5  ;;  %v209_v41 = vmul.f32 %v1873_v23, %v2002_v5 }
  0xd2   :  { %v434_v57 = vadd.f32 %v370_v62, %v206_v30  ;;  %v435_v42 = vadd.f32 %v371_v63, %v207_v46  ;;  %v600_v21 = vmul.f32 %v1858_v16, %v2056_v55  ;;  %v601_v37 = vmul.f32 %v1860_v17, %v2056_v55 }
  0xd3   :  { %v602_v45 = vmul.f32 %v1862_v18, %v2056_v55 }
  0xd4   :  { %v744_v51 = vpop.permute.xlu1 %743 }
  0xd5   :  { %v816_v32 = vadd.f32 %v744_v51, %v656_v20  ;;  %v817_v3 = vadd.f32 %v744_v51, %v657_v26  ;;  %v818_v50 = vadd.f32 %v744_v51, %v658_v56  ;;  %v819_v6 = vadd.f32 %v744_v51, %v659_v36 }
  0xd6   :  { %v210_v20 = vmul.f32 %v1875_v24, %v2002_v5  ;;  %v211_v26 = vmul.f32 %v1877_v25, %v2002_v5  ;;  %v432_v56 = vadd.f32 %v368_v47, %v204_v28  ;;  %v433_v36 = vadd.f32 %v369_v53, %v205_v29 }
  0xd7   :  { %v881_v54 = vmax.f32 %v817_v3, 0.0  ;;  %v883_v49 = vmax.f32 %v819_v6, 0.0  ;;  %v880_v58 = vmax.f32 %v816_v32, 0.0  ;;  %v882_v59 = vmax.f32 %v818_v50, 0.0 }
  0xd8   :  { %v2058_v60 = vpop.permute.xlu1 %104  ;;  %v603_v51 = vmul.f32 %v1864_v19, %v2056_v55  ;;  %v660_v3 = vadd.f32 %v596_v10, %v432_v56  ;;  %v661_v5 = vadd.f32 %v597_v39, %v433_v36  ;;  %v662_v50 = vadd.f32 %v598_v38, %v434_v57 }
  0xd9   :  { %v933_v35 = vpack.c.bf16 %v881_v54, %v877_v52  ;;  %v935_v13 = vpack.c.bf16 %v883_v49, %v879_v0  ;;  %v932_v40 = vpack.c.bf16 %v880_v58, %v876_v27  ;;  %v934_v1 = vpack.c.bf16 %v882_v59, %v878_v61  ;;  %v749_v52 = vpop.permute.xlu0 %748 }
  0xda   :  { %v663_v6 = vadd.f32 %v599_v31, %v435_v42  ;;  %v436_v54 = vadd.f32 %v372_v4, %v208_v34  ;;  %v437_v49 = vadd.f32 %v373_v48, %v209_v41  ;;  %v438_v58 = vadd.f32 %v374_v44, %v210_v20  ;;  %v2761_v20 = vld [vmem:[#allocation8_spill] sm:$0xff] }
  0xdb   :  { %1000 = vmatprep.subr.bf16.mxu0 %v933_v35  ;;  %1053 = vmatprep.subr.bf16.mxu1 %v935_v13  ;;  %v439_v59 = vadd.f32 %v375_v7, %v211_v26  ;;  %v820_v13 = vadd.f32 %v749_v52, %v660_v3  ;;  %v380_v26 = vmul.f32 %v1850_v11, %v2761_v20 }
  0xdc   :  { %1001 = vmatpush1.bf16.msra.mxu0 %v932_v40  ;;  %1054 = vmatpush1.bf16.msra.mxu1 %v934_v1  ;;  %v664_v0 = vadd.f32 %v600_v21, %v436_v54  ;;  %v665_v27 = vadd.f32 %v601_v37, %v437_v49  ;;  %v666_v61 = vadd.f32 %v602_v45, %v438_v58 }
  0xdd   :  { %v2060_v43 = vpop.permute.xlu1 %277  ;;  %v667_v35 = vadd.f32 %v603_v51, %v439_v59  ;;  %v821_v40 = vadd.f32 %v749_v52, %v661_v5  ;;  %v822_v1 = vadd.f32 %v749_v52, %v662_v50  ;;  %v823_v28 = vadd.f32 %v749_v52, %v663_v6 }
  0xde   :  { %v884_v7 = vmax.f32 %v820_v13, 0.0  ;;  %v381_v56 = vmul.f32 %v1854_v14, %v2761_v20  ;;  %v382_v36 = vmul.f32 %v1852_v12, %v2761_v20  ;;  %v383_v57 = vmul.f32 %v1856_v15, %v2761_v20 }
  0xdf   :  { %v885_v48 = vmax.f32 %v821_v40, 0.0  ;;  %v887_v44 = vmax.f32 %v823_v28, 0.0  ;;  %v886_v10 = vmax.f32 %v822_v1, 0.0  ;;  %v216_v42 = vmul.f32 %v1871_v22, %v2082_v8  ;;  %v2158_v40 = vpop.permute.xlu0 %119 }
  0xe0   :  { %v217_v21 = vmul.f32 %v1873_v23, %v2082_v8  ;;  %v218_v37 = vmul.f32 %v1875_v24, %v2082_v8  ;;  %v219_v45 = vmul.f32 %v1877_v25, %v2082_v8  ;;  %v376_v51 = vmul.f32 %v1850_v11, %v2060_v43 }
  0xe1   :  { %v377_v3 = vmul.f32 %v1854_v14, %v2060_v43  ;;  %v378_v5 = vmul.f32 %v1852_v12, %v2060_v43  ;;  %v379_v50 = vmul.f32 %v1856_v15, %v2060_v43  ;;  %v212_v6 = vmul.f32 %v1871_v22, %v2058_v60 }
  0xe2   :  { %v2084_v9 = vpop.permute.xlu1 %505  ;;  %v213_v54 = vmul.f32 %v1873_v23, %v2058_v60  ;;  %v214_v8 = vmul.f32 %v1875_v24, %v2058_v60  ;;  %v215_v49 = vmul.f32 %v1877_v25, %v2058_v60  ;;  %v447_v13 = vadd.f32 %v383_v57, %v219_v45 }
  0xe3   :  { %v604_v59 = vmul.f32 %v1858_v16, %v2084_v9  ;;  %v605_v43 = vmul.f32 %v1860_v17, %v2084_v9  ;;  %v606_v52 = vmul.f32 %v1862_v18, %v2084_v9  ;;  %v440_v60 = vadd.f32 %v376_v51, %v212_v6 }
  0xe4   :  { %v441_v1 = vadd.f32 %v377_v3, %v213_v54  ;;  %v442_v28 = vadd.f32 %v378_v5, %v214_v8 }
  0xe6   :  { %v2110_v32 = vpop.permute.xlu1 %509 }
  0xeb   :  { %v754_v55 = vpop.permute.xlu1 %753 }
  0xec   :  { %v824_v29 = vadd.f32 %v754_v55, %v664_v0  ;;  %v825_v30 = vadd.f32 %v754_v55, %v665_v27  ;;  %v826_v46 = vadd.f32 %v754_v55, %v666_v61  ;;  %v827_v47 = vadd.f32 %v754_v55, %v667_v35 }
  0xed   :  { %v607_v0 = vmul.f32 %v1864_v19, %v2084_v9  ;;  %v444_v27 = vadd.f32 %v380_v26, %v216_v42  ;;  %v445_v61 = vadd.f32 %v381_v56, %v217_v21  ;;  %v446_v35 = vadd.f32 %v382_v36, %v218_v37 }
  0xee   :  { %v889_v53 = vmax.f32 %v825_v30, 0.0  ;;  %v891_v62 = vmax.f32 %v827_v47, 0.0  ;;  %v888_v63 = vmax.f32 %v824_v29, 0.0  ;;  %v890_v2 = vmax.f32 %v826_v46, 0.0 }
  0xef   :  { %v2112_v4 = vpop.permute.xlu1 %114  ;;  %v443_v55 = vadd.f32 %v379_v50, %v215_v49  ;;  %v608_v29 = vmul.f32 %v1858_v16, %v2110_v32  ;;  %v609_v30 = vmul.f32 %v1860_v17, %v2110_v32  ;;  %v610_v46 = vmul.f32 %v1862_v18, %v2110_v32 }
  0xf0   :  { %v937_v39 = vpack.c.bf16 %v889_v53, %v885_v48  ;;  %v939_v38 = vpack.c.bf16 %v891_v62, %v887_v44  ;;  %v936_v31 = vpack.c.bf16 %v888_v63, %v884_v7  ;;  %v938_v34 = vpack.c.bf16 %v890_v2, %v886_v10  ;;  %v759_v48 = vpop.permute.xlu0 %758 }
  0xf1   :  { %v611_v9 = vmul.f32 %v1864_v19, %v2110_v32  ;;  %v668_v53 = vadd.f32 %v604_v59, %v440_v60  ;;  %v669_v62 = vadd.f32 %v605_v43, %v441_v1  ;;  %v670_v63 = vadd.f32 %v606_v52, %v442_v28 }
  0xf2   :  { %1002 = vmatprep.subr.bf16.mxu0 %v937_v39  ;;  %1055 = vmatprep.subr.bf16.mxu1 %v939_v38  ;;  %v671_v2 = vadd.f32 %v607_v0, %v443_v55  ;;  %v672_v44 = vadd.f32 %v608_v29, %v444_v27  ;;  %v673_v7 = vadd.f32 %v609_v30, %v445_v61 }
  0xf3   :  { %1003 = vmatpush1.bf16.msra.mxu0 %v936_v31  ;;  %1056 = vmatpush1.bf16.msra.mxu1 %v938_v34  ;;  %v674_v10 = vadd.f32 %v610_v46, %v446_v35  ;;  %v675_v39 = vadd.f32 %v611_v9, %v447_v13  ;;  %v829_v31 = vadd.f32 %v759_v48, %v669_v62  ;;  %v2762_v62 = vld [vmem:[#allocation9_spill] sm:$0xff] }
  0xf4   :  { %v2114_v41 = vpop.permute.xlu1 %285  ;;  %v831_v34 = vadd.f32 %v759_v48, %v671_v2  ;;  %v828_v20 = vadd.f32 %v759_v48, %v668_v53  ;;  %v830_v26 = vadd.f32 %v759_v48, %v670_v63  ;;  %v220_v27 = vmul.f32 %v1871_v22, %v2112_v4  ;;  %v2194_v29 = vpop.permute.xlu0 %129 }
  0xf5   :  { %v893_v3 = vmax.f32 %v829_v31, 0.0  ;;  %v384_v43 = vmul.f32 %v1850_v11, %v2114_v41  ;;  %v385_v52 = vmul.f32 %v1854_v14, %v2114_v41  ;;  %v387_v0 = vmul.f32 %v1856_v15, %v2114_v41 }
  0xf6   :  { %v895_v5 = vmax.f32 %v831_v34, 0.0  ;;  %v892_v50 = vmax.f32 %v828_v20, 0.0  ;;  %v894_v6 = vmax.f32 %v830_v26, 0.0  ;;  %v221_v61 = vmul.f32 %v1873_v23, %v2112_v4  ;;  %v2763_v26 = vld [vmem:[#allocation10_spill] sm:$0xff] }
  0xf7   :  { %v386_v35 = vmul.f32 %v1852_v12, %v2114_v41  ;;  %v223_v60 = vmul.f32 %v1877_v25, %v2112_v4  ;;  %v222_v41 = vmul.f32 %v1875_v24, %v2112_v4  ;;  %v448_v46 = vadd.f32 %v384_v43, %v220_v27 }
  0xf8   :  { %v449_v9 = vadd.f32 %v385_v52, %v221_v61  ;;  %v388_v63 = vmul.f32 %v1850_v11, %v2762_v62  ;;  %v389_v2 = vmul.f32 %v1854_v14, %v2762_v62  ;;  %v226_v31 = vmul.f32 %v1875_v24, %v2158_v40  ;;  %v2764_v52 = vld [vmem:[#allocation11_spill] sm:$0xff] }
  0xf9   :  { %v2148_v58 = vpop.permute.xlu1 %513  ;;  %v451_v53 = vadd.f32 %v387_v0, %v223_v60  ;;  %v450_v48 = vadd.f32 %v386_v35, %v222_v41  ;;  %v391_v20 = vmul.f32 %v1856_v15, %v2762_v62  ;;  %v2240_v43 = vmul.f32 %v1856_v15, %v2763_v26 }
  0xfa   :  { %v612_v1 = vmul.f32 %v1858_v16, %v2148_v58  ;;  %v613_v28 = vmul.f32 %v1860_v17, %v2148_v58  ;;  %v615_v55 = vmul.f32 %v1864_v19, %v2148_v58  ;;  %v614_v30 = vmul.f32 %v1862_v18, %v2148_v58 }
  0xfb   :  { %v224_v58 = vmul.f32 %v1871_v22, %v2158_v40  ;;  %v2248_v27 = vmul.f32 %v1854_v14, %v2764_v52 }
  0xfc   :  { %v678_v34 = vadd.f32 %v614_v30, %v450_v48 }
  0xfd   :  { %v2168_v47 = vpop.permute.xlu1 %517 }
 0x102   :  { %v764_v38 = vpop.permute.xlu1 %763 }
 0x103   :  { %v832_v56 = vadd.f32 %v764_v38, %v672_v44  ;;  %v833_v36 = vadd.f32 %v764_v38, %v673_v7  ;;  %v834_v57 = vadd.f32 %v764_v38, %v674_v10  ;;  %v835_v32 = vadd.f32 %v764_v38, %v675_v39 }
 0x104   :  { %v390_v44 = vmul.f32 %v1852_v12, %v2762_v62  ;;  %v676_v7 = vadd.f32 %v612_v1, %v448_v46  ;;  %v677_v10 = vadd.f32 %v613_v28, %v449_v9  ;;  %v679_v39 = vadd.f32 %v615_v55, %v451_v53 }
 0x105   :  { %v897_v42 = vmax.f32 %v833_v36, 0.0  ;;  %v899_v21 = vmax.f32 %v835_v32, 0.0  ;;  %v896_v37 = vmax.f32 %v832_v56, 0.0  ;;  %v898_v45 = vmax.f32 %v834_v57, 0.0  ;;  %v769_v32 = vpop.permute.xlu0 %768 }
 0x106   :  { %v2170_v51 = vpop.permute.xlu1 %124  ;;  %v225_v38 = vmul.f32 %v1873_v23, %v2158_v40  ;;  %v2216_v56 = vmul.f32 %v1850_v11, %v2763_v26  ;;  %v227_v36 = vmul.f32 %v1877_v25, %v2158_v40  ;;  %v2222_v57 = vmul.f32 %v1854_v14, %v2763_v26 }
 0x107   :  { %v941_v54 = vpack.c.bf16 %v897_v42, %v893_v3  ;;  %v943_v8 = vpack.c.bf16 %v899_v21, %v895_v5  ;;  %v940_v49 = vpack.c.bf16 %v896_v37, %v892_v50  ;;  %v942_v59 = vpack.c.bf16 %v898_v45, %v894_v6 }
 0x108   :  { %v616_v42 = vmul.f32 %v1858_v16, %v2168_v47  ;;  %v617_v21 = vmul.f32 %v1860_v17, %v2168_v47  ;;  %v618_v37 = vmul.f32 %v1862_v18, %v2168_v47  ;;  %v619_v45 = vmul.f32 %v1864_v19, %v2168_v47 }
 0x109   :  { %1004 = vmatprep.subr.bf16.mxu0 %v941_v54  ;;  %1057 = vmatprep.subr.bf16.mxu1 %v943_v8  ;;  %v837_v40 = vadd.f32 %v769_v32, %v677_v10  ;;  %v839_v5 = vadd.f32 %v769_v32, %v679_v39  ;;  %v836_v50 = vadd.f32 %v769_v32, %v676_v7 }
 0x10a   :  { %1005 = vmatpush1.bf16.msra.mxu0 %v940_v49  ;;  %1058 = vmatpush1.bf16.msra.mxu1 %v942_v59  ;;  %v452_v6 = vadd.f32 %v388_v63, %v224_v58  ;;  %v453_v54 = vadd.f32 %v389_v2, %v225_v38  ;;  %v454_v8 = vadd.f32 %v390_v44, %v226_v31 }
 0x10b   :  { %v2184_v13 = vpop.permute.xlu1 %293  ;;  %v838_v49 = vadd.f32 %v769_v32, %v678_v34  ;;  %v2236_v59 = vmul.f32 %v1852_v12, %v2763_v26  ;;  %v2244_v47 = vmul.f32 %v1850_v11, %v2764_v52  ;;  %v455_v0 = vadd.f32 %v391_v20, %v227_v36 }
 0x10c   :  { %v680_v61 = vadd.f32 %v616_v42, %v452_v6  ;;  %v681_v35 = vadd.f32 %v617_v21, %v453_v54  ;;  %v682_v60 = vadd.f32 %v618_v37, %v454_v8  ;;  %v901_v28 = vmax.f32 %v837_v40, 0.0 }
 0x10d   :  { %v683_v1 = vadd.f32 %v619_v45, %v455_v0  ;;  %v903_v55 = vmax.f32 %v839_v5, 0.0  ;;  %v900_v41 = vmax.f32 %v836_v50, 0.0  ;;  %v392_v30 = vmul.f32 %v1850_v11, %v2184_v13  ;;  %v140_v0 = vpop.permute.xlu0 %139 }
 0x10e   :  { %v393_v46 = vmul.f32 %v1854_v14, %v2184_v13  ;;  %v395_v9 = vmul.f32 %v1856_v15, %v2184_v13  ;;  %v902_v62 = vmax.f32 %v838_v49, 0.0  ;;  %v228_v7 = vmul.f32 %v1871_v22, %v2170_v51 }
 0x10f   :  { %v229_v10 = vmul.f32 %v1873_v23, %v2170_v51  ;;  %v231_v39 = vmul.f32 %v1877_v25, %v2170_v51  ;;  %v394_v58 = vmul.f32 %v1852_v12, %v2184_v13  ;;  %v230_v26 = vmul.f32 %v1875_v24, %v2170_v51 }
 0x110   :  { %v522_v4 = vpop.permute.xlu1 %521  ;;  %v456_v37 = vadd.f32 %v392_v30, %v228_v7  ;;  %v406_v51 = vmul.f32 %v1852_v12, %v2764_v52  ;;  %v407_v8 = vmul.f32 %v1856_v15, %v2764_v52  ;;  %v232_v49 = vmul.f32 %v1871_v22, %v2194_v29 }
 0x111   :  { %v620_v36 = vmul.f32 %v1858_v16, %v522_v4  ;;  %v621_v32 = vmul.f32 %v1860_v17, %v522_v4  ;;  %v623_v42 = vmul.f32 %v1864_v19, %v522_v4  ;;  %v457_v45 = vadd.f32 %v393_v46, %v229_v10 }
 0x112   :  { %v459_v40 = vadd.f32 %v395_v9, %v231_v39  ;;  %v622_v13 = vmul.f32 %v1862_v18, %v522_v4  ;;  %v233_v4 = vmul.f32 %v1873_v23, %v2194_v29  ;;  %v240_v30 = vmul.f32 %v1871_v22, %v140_v0 }
 0x113   :  { %v241_v46 = vmul.f32 %v1873_v23, %v140_v0  ;;  %v242_v9 = vmul.f32 %v1875_v24, %v140_v0  ;;  %v460_v39 = vadd.f32 %v2216_v56, %v232_v49 }
 0x114   :  { %v2232_v3 = vpop.permute.xlu1 %525 }
 0x119   :  { %v774_v53 = vpop.permute.xlu1 %773 }
 0x11a   :  { %v840_v63 = vadd.f32 %v774_v53, %v680_v61  ;;  %v841_v2 = vadd.f32 %v774_v53, %v681_v35  ;;  %v842_v48 = vadd.f32 %v774_v53, %v682_v60  ;;  %v843_v44 = vadd.f32 %v774_v53, %v683_v1 }
 0x11b   :  { %v458_v61 = vadd.f32 %v394_v58, %v230_v26  ;;  %v684_v35 = vadd.f32 %v620_v36, %v456_v37  ;;  %v685_v60 = vadd.f32 %v621_v32, %v457_v45  ;;  %v687_v1 = vadd.f32 %v623_v42, %v459_v40 }
 0x11c   :  { %v905_v38 = vmax.f32 %v841_v2, 0.0  ;;  %v907_v31 = vmax.f32 %v843_v44, 0.0  ;;  %v904_v34 = vmax.f32 %v840_v63, 0.0  ;;  %v906_v20 = vmax.f32 %v842_v48, 0.0 }
 0x11d   :  { %v2269_v21 = vpop.permute.xlu1 %134  ;;  %v243_v53 = vmul.f32 %v1877_v25, %v140_v0  ;;  %v624_v63 = vmul.f32 %v1858_v16, %v2232_v3  ;;  %v625_v2 = vmul.f32 %v1860_v17, %v2232_v3  ;;  %v626_v48 = vmul.f32 %v1862_v18, %v2232_v3 }
 0x11e   :  { %v945_v5 = vpack.c.bf16 %v905_v38, %v901_v28  ;;  %v947_v50 = vpack.c.bf16 %v907_v31, %v903_v55  ;;  %v944_v6 = vpack.c.bf16 %v904_v34, %v900_v41  ;;  %v946_v54 = vpack.c.bf16 %v906_v20, %v902_v62  ;;  %v779_v62 = vpop.permute.xlu0 %778 }
 0x11f   :  { %v234_v28 = vmul.f32 %v1875_v24, %v2194_v29  ;;  %v686_v55 = vadd.f32 %v622_v13, %v458_v61  ;;  %v235_v41 = vmul.f32 %v1877_v25, %v2194_v29  ;;  %v627_v29 = vmul.f32 %v1864_v19, %v2232_v3 }
 0x120   :  { %1006 = vmatprep.subr.bf16.mxu0 %v945_v5  ;;  %1059 = vmatprep.subr.bf16.mxu1 %v947_v50  ;;  %v2296_v44 = vadd.f32 %v779_v62, %v685_v60  ;;  %v2298_v7 = vadd.f32 %v779_v62, %v687_v1  ;;  %v2300_v10 = vadd.f32 %v779_v62, %v684_v35 }
 0x121   :  { %1007 = vmatpush1.bf16.msra.mxu0 %v944_v6  ;;  %1060 = vmatpush1.bf16.msra.mxu1 %v946_v54  ;;  %v461_v58 = vadd.f32 %v2222_v57, %v233_v4  ;;  %v462_v38 = vadd.f32 %v2236_v59, %v234_v28  ;;  %v2305_v31 = vadd.f32 %v779_v62, %v686_v55 }
 0x122   :  { %v302_v52 = vpop.permute.xlu1 %301  ;;  %v463_v34 = vadd.f32 %v2240_v43, %v235_v41  ;;  %v468_v20 = vadd.f32 %v2244_v47, %v240_v30  ;;  %v469_v3 = vadd.f32 %v2248_v27, %v241_v46  ;;  %v470_v26 = vadd.f32 %v406_v51, %v242_v9  ;;  %v794_v60 = vpop.permute.xlu0 %793 }
 0x123   :  { %v471_v32 = vadd.f32 %v407_v8, %v243_v53  ;;  %v688_v42 = vadd.f32 %v624_v63, %v460_v39  ;;  %v689_v37 = vadd.f32 %v625_v2, %v461_v58  ;;  %v690_v45 = vadd.f32 %v626_v48, %v462_v38 }
 0x124   :  { %v691_v40 = vadd.f32 %v627_v29, %v463_v34  ;;  %v909_v56 = vmax.f32 %v2296_v44, 0.0  ;;  %v911_v57 = vmax.f32 %v2298_v7, 0.0  ;;  %v908_v59 = vmax.f32 %v2300_v10, 0.0 }
 0x125   :  { %v236_v43 = vmul.f32 %v1871_v22, %v2269_v21  ;;  %v237_v47 = vmul.f32 %v1873_v23, %v2269_v21  ;;  %v238_v27 = vmul.f32 %v1875_v24, %v2269_v21  ;;  %v910_v13 = vmax.f32 %v2305_v31, 0.0 }
 0x126   :  { %v400_v5 = vmul.f32 %v1850_v11, %v302_v52  ;;  %v401_v50 = vmul.f32 %v1854_v14, %v302_v52  ;;  %v402_v6 = vmul.f32 %v1852_v12, %v302_v52  ;;  %v403_v54 = vmul.f32 %v1856_v15, %v302_v52 }
 0x127   :  { %v530_v36 = vpop.permute.xlu1 %529  ;;  %v239_v24 = vmul.f32 %v1877_v25, %v2269_v21 }
 0x128   :  { %v628_v11 = vmul.f32 %v1858_v16, %v530_v36  ;;  %v629_v14 = vmul.f32 %v1860_v17, %v530_v36  ;;  %v630_v12 = vmul.f32 %v1862_v18, %v530_v36  ;;  %v631_v15 = vmul.f32 %v1864_v19, %v530_v36 }
 0x129   :  { %v464_v1 = vadd.f32 %v400_v5, %v236_v43  ;;  %v465_v4 = vadd.f32 %v401_v50, %v237_v47  ;;  %v466_v28 = vadd.f32 %v402_v6, %v238_v27  ;;  %v467_v55 = vadd.f32 %v403_v54, %v239_v24 }
 0x12b   :  { %v534_v51 = vpop.permute.xlu1 %533  ;;  %v693_v53 = vadd.f32 %v629_v14, %v465_v4  ;;  %v695_v62 = vadd.f32 %v631_v15, %v467_v55 }
 0x12c   :  { %v632_v8 = vmul.f32 %v1858_v16, %v534_v51  ;;  %v633_v22 = vmul.f32 %v1860_v17, %v534_v51  ;;  %v634_v23 = vmul.f32 %v1862_v18, %v534_v51  ;;  %v635_v49 = vmul.f32 %v1864_v19, %v534_v51 }
 0x12d   :  { %v692_v18 = vadd.f32 %v628_v11, %v464_v1  ;;  %v694_v19 = vadd.f32 %v630_v12, %v466_v28 }
 0x12e   :  { %v696_v0 = vadd.f32 %v632_v8, %v468_v20  ;;  %v697_v61 = vadd.f32 %v633_v22, %v469_v3  ;;  %v699_v35 = vadd.f32 %v635_v49, %v471_v32  ;;  %v698_v52 = vadd.f32 %v634_v23, %v470_v26 }
 0x130   :  { %v784_v41 = vpop.permute.xlu1 %783  ;;  %v857_v30 = vadd.f32 %v794_v60, %v697_v61  ;;  %v859_v25 = vadd.f32 %v794_v60, %v699_v35  ;;  %v856_v21 = vadd.f32 %v794_v60, %v696_v0  ;;  %v858_v58 = vadd.f32 %v794_v60, %v698_v52 }
 0x131   :  { %v848_v16 = vadd.f32 %v784_v41, %v688_v42  ;;  %v849_v46 = vadd.f32 %v784_v41, %v689_v37  ;;  %v850_v17 = vadd.f32 %v784_v41, %v690_v45  ;;  %v851_v9 = vadd.f32 %v784_v41, %v691_v40 }
 0x132   :  { %v921_v7 = vmax.f32 %v857_v30, 0.0  ;;  %v923_v10 = vmax.f32 %v859_v25, 0.0  ;;  %v920_v39 = vmax.f32 %v856_v21, 0.0  ;;  %v922_v43 = vmax.f32 %v858_v58, 0.0 }
 0x133   :  { %v913_v63 = vmax.f32 %v849_v46, 0.0  ;;  %v915_v2 = vmax.f32 %v851_v9, 0.0  ;;  %v912_v48 = vmax.f32 %v848_v16, 0.0  ;;  %v914_v29 = vmax.f32 %v850_v17, 0.0 }
 0x134   :  { %v789_v44 = vpop.permute.xlu1 %788 }
 0x135   :  { %v852_v38 = vadd.f32 %v789_v44, %v692_v18  ;;  %v853_v31 = vadd.f32 %v789_v44, %v693_v53  ;;  %v854_v34 = vadd.f32 %v789_v44, %v694_v19  ;;  %v855_v20 = vadd.f32 %v789_v44, %v695_v62 }
 0x136   :  { %v949_v3 = vpack.c.bf16 %v913_v63, %v909_v56  ;;  %v951_v26 = vpack.c.bf16 %v915_v2, %v911_v57  ;;  %v948_v36 = vpack.c.bf16 %v912_v48, %v908_v59  ;;  %v950_v32 = vpack.c.bf16 %v914_v29, %v910_v13  ;;  %v1623_v56 = vld [vmem:[%s2727_s3] sm:$0xff]   ;;  %v1624_v57 = vld [vmem:[%s2727_s3 + $0x8] sm:$0xff]   ;;  %v972_v13 = vpop.permute.xlu0 %971 }
 0x137   :  { %v917_v42 = vmax.f32 %v853_v31, 0.0  ;;  %v919_v37 = vmax.f32 %v855_v20, 0.0  ;;  %v916_v45 = vmax.f32 %v852_v38, 0.0  ;;  %v918_v40 = vmax.f32 %v854_v34, 0.0 }
 0x138   :  { %1008 = vmatprep.subr.bf16.mxu0 %v949_v3  ;;  %1061 = vmatprep.subr.bf16.mxu1 %v951_v26  ;;  %v1628_v59 = vmov -inf   ;;  %v967_v6 = vpop.permute.xlu1 %966  ;;  %v2765_v38 = vlaneseq }
 0x139   :  { %1009 = vmatpush1.bf16.msra.mxu0 %v948_v36  ;;  %1062 = vmatpush1.bf16.msra.mxu1 %v950_v32  ;;  %v953_v47 = vpack.c.bf16 %v921_v7, %v917_v42  ;;  %v955_v27 = vpack.c.bf16 %v923_v10, %v919_v37  ;;  %v952_v5 = vpack.c.bf16 %v920_v39, %v916_v45 }
 0x13a   :  { %v954_v50 = vpack.c.bf16 %v922_v43, %v918_v40  ;;  %32 = vst.msk [vmem:[#allocation2 + $0x20] sm:$0xff] %vm27_vm0, %v1628_v59  ;;  %28 = vst.msk [vmem:[#allocation2] sm:$0xff] %vm27_vm0, %v1628_v59  ;;  %v982_v28 = vpop.permute.xlu0 %981  ;;  %v2415_v31 = vand.u32 127, %v2765_v38 }
 0x13b   :  { %1010 = vmatprep.subr.bf16.mxu0 %v953_v47  ;;  %1063 = vmatprep.subr.bf16.mxu1 %v955_v27  ;;  %29 = vst.msk [vmem:[#allocation2 + $0x8] sm:$0xff] %vm27_vm0, %v1628_v59  ;;  %30 = vst.msk [vmem:[#allocation2 + $0x10] sm:$0xff] %vm27_vm0, %v1628_v59 }
 0x13c   :  { %31 = vst.msk [vmem:[#allocation2 + $0x18] sm:$0xff] %vm27_vm0, %v1628_v59  ;;  %33 = vst.msk [vmem:[#allocation2 + $0x28] sm:$0xff] %vm27_vm0, %v1628_v59  ;;  %v977_v55 = vpop.permute.xlu1 %976  ;;  %v2422_v3 = vadd.s32 128, %v2415_v31 }
 0x13d   :  { %1011 = vmatpush1.bf16.msra.mxu0 %v952_v5  ;;  %1064 = vmatpush1.bf16.msra.mxu1 %v954_v50  ;;  %34 = vst.msk [vmem:[#allocation2 + $0x30] sm:$0xff] %vm27_vm0, %v1628_v59  ;;  %35 = vst.msk [vmem:[#allocation2 + $0x38] sm:$0xff] %vm27_vm0, %v1628_v59 }
 0x140   :  { %1029 = vmatmul.mubr.bf16.vlgmr.msra.gmra.mrb[0].mxu0 %v1623_v56  ;;  %1082 = vmatmul.mubr.bf16.vlgmr.msra.gmra.mrb[0].mxu1 %v1623_v56 }
 0x141   :  { %1038 = vmatprep.mubr.bf16.mxu0 %v2755_v33  ;;  %1091 = vmatprep.mubr.bf16.mxu1 %v2755_v33  ;;  %v2417_v34 = vld [vmem:[#allocation2 + $0x20] sm:$0xff] }
 0x142   :  { %v2419_v20 = vld [vmem:[#allocation2] sm:$0xff]  ;;  %v2445_v42 = vld [vmem:[#allocation2 + $0x8] sm:$0xff] }
 0x143   :  { %v2454_v40 = vld [vmem:[#allocation2 + $0x28] sm:$0xff] }
 0x148   :  { %1039 = vmatmul.mubr.bf16.gmra.mrb[4].mxu0 %v1624_v57  ;;  %1092 = vmatmul.mubr.bf16.gmra.mrb[4].mxu1 %v1624_v57  ;;  %v2481_v57 = vld [vmem:[#allocation2 + $0x10] sm:$0xff] }
 0x213   :  { %v1030_v54 = vpop.f32.mrb[0].mxu0  ;;  %v1083_v51 = vpop.f32.mrb[0].mxu1 }
 0x214   :  { %v2366_v8 = vadd.f32 %v1030_v54, %v967_v6  ;;  %v2368_v22 = vadd.f32 %v1083_v51, %v967_v6  ;;  %v1032_v23 = vpop.f32.mrb[1].mxu0  ;;  %v1085_v49 = vpop.f32.mrb[1].mxu1 }
 0x215   :  { %v2370_v24 = vadd.f32 %v1032_v23, %v967_v6  ;;  %v2372_v11 = vadd.f32 %v1085_v49, %v967_v6  ;;  %v1034_v14 = vpop.f32.mrb[2].mxu0  ;;  %v1087_v12 = vpop.f32.mrb[2].mxu1  ;;  %v2491_v6 = vld [vmem:[#allocation2 + $0x30] sm:$0xff] }
 0x216   :  { %v2374_v15 = vadd.f32 %v1034_v14, %v972_v13  ;;  %v2376_v0 = vadd.f32 %v1087_v12, %v972_v13  ;;  %v1036_v33 = vpop.f32.mrb[3].mxu0  ;;  %v1089_v61 = vpop.f32.mrb[3].mxu1 }
 0x217   :  { %v2378_v35 = vadd.f32 %v1036_v33, %v972_v13  ;;  %v2380_v60 = vadd.f32 %v1089_v61, %v972_v13  ;;  %v1256_v1 = vmax.f32 %v2368_v22, %v2372_v11  ;;  %v1123_v4 = vmax.f32 %v2366_v8, %v2370_v24  ;;  %v2539_v33 = vld [vmem:[#allocation2 + $0x38] sm:$0xff] }
 0x219   :  { %1257 = vmax.xlane.f32.xlu0 %v1256_v1  ;;  %1124 = vmax.xlane.f32.xlu1 %v1123_v4  ;;  %v1126_v30 = vmax.f32 %v2374_v15, %v2378_v35  ;;  %v1259_v25 = vmax.f32 %v2376_v0, %v2380_v60 }
 0x21b   :  { %v1040_v52 = vpop.f32.mrb[4].mxu0  ;;  %v1093_v41 = vpop.f32.mrb[4].mxu1 }
 0x21c   :  { %v2390_v21 = vadd.f32 %v1040_v52, %v977_v55  ;;  %v2392_v16 = vadd.f32 %v1093_v41, %v977_v55  ;;  %v1042_v46 = vpop.f32.mrb[5].mxu0  ;;  %v1095_v17 = vpop.f32.mrb[5].mxu1 }
 0x21d   :  { %v2394_v9 = vadd.f32 %v1042_v46, %v977_v55  ;;  %v2396_v18 = vadd.f32 %v1095_v17, %v977_v55  ;;  %v1044_v53 = vpop.f32.mrb[6].mxu0  ;;  %v1097_v19 = vpop.f32.mrb[6].mxu1  ;;  %1127 = vmax.xlane.f32.xlu0 %v1126_v30  ;;  %1260 = vmax.xlane.f32.xlu1 %v1259_v25 }
 0x21e   :  { %v2398_v62 = vadd.f32 %v1044_v53, %v982_v28  ;;  %v2400_v63 = vadd.f32 %v1097_v19, %v982_v28  ;;  %v1046_v2 = vpop.f32.mrb[7].mxu0  ;;  %v1099_v48 = vpop.f32.mrb[7].mxu1 }
 0x21f   :  { %v2402_v29 = vadd.f32 %v1046_v2, %v982_v28  ;;  %v2404_v44 = vadd.f32 %v1099_v48, %v982_v28  ;;  %v1129_v7 = vmax.f32 %v2390_v21, %v2394_v9  ;;  %v1262_v10 = vmax.f32 %v2392_v16, %v2396_v18 }
 0x221   :  { %1130 = vmax.xlane.f32.xlu0 %v1129_v7  ;;  %1263 = vmax.xlane.f32.xlu1 %v1262_v10  ;;  %v1132_v39 = vmax.f32 %v2398_v62, %v2402_v29  ;;  %v1265_v58 = vmax.f32 %v2400_v63, %v2404_v44 }
 0x225   :  { %1133 = vmax.xlane.f32.xlu0 %v1132_v39  ;;  %1266 = vmax.xlane.f32.xlu1 %v1265_v58 }
 0x2a6   :  { %v2424_v26 = vpop.xlane.xlu0 %1257  ;;  %v2426_v36 = vpop.xlane.xlu1 %1124 }
 0x2a7   :  { %vm1268_vm1 = vcmp.ge.f32.partialorder %v2368_v22, %v2424_v26  ;;  %vm1269_vm2 = vcmp.ge.f32.partialorder %v2372_v11, %v2424_v26  ;;  %vm1353_vm3 = vcmp.gt.f32.partialorder %v2424_v26, %v2417_v34  ;;  %vm1135_vm4 = vcmp.ge.f32.partialorder %v2366_v8, %v2426_v36 }
 0x2a8   :  { %v1374_v32 = vsel %vm1353_vm3, %v2424_v26, %v2417_v34  ;;  %vm1136_vm5 = vcmp.ge.f32.partialorder %v2370_v24, %v2426_v36  ;;  %vm1219_vm6 = vcmp.gt.f32.partialorder %v2426_v36, %v2419_v20  ;;  %v1143_v37 = vsel %vm1135_vm4, %v2415_v31, 1073741824 }
 0x2a9   :  { %1378 = vst.msk [vmem:[#allocation2 + $0x20] sm:$0xff] %vm27_vm0, %v1374_v32  ;;  %v1240_v45 = vsel %vm1219_vm6, %v2426_v36, %v2419_v20  ;;  %v1144_v43 = vsel %vm1136_vm5, %v2422_v3, 1073741824  ;;  %v1276_v47 = vsel %vm1268_vm1, %v2415_v31, 1073741824  ;;  %v1277_v27 = vsel %vm1269_vm2, %v2422_v3, 1073741824 }
 0x2aa   :  { %1244 = vst.msk [vmem:[#allocation2] sm:$0xff] %vm27_vm0, %v1240_v45  ;;  %v2460_v5 = vpop.xlane.xlu0 %1127  ;;  %v2462_v50 = vpop.xlane.xlu1 %1260  ;;  %vm1151_vm7 = vcmp.lt.s32.totalorder %v1143_v37, %v1144_v43  ;;  %vm1284_vm8 = vcmp.lt.s32.totalorder %v1276_v47, %v1277_v27 }
 0x2ab   :  { %vm1137_vm9 = vcmp.ge.f32.partialorder %v2374_v15, %v2460_v5  ;;  %vm1138_vm10 = vcmp.ge.f32.partialorder %v2378_v35, %v2460_v5  ;;  %vm1220_vm11 = vcmp.gt.f32.partialorder %v2460_v5, %v2445_v42  ;;  %vm1270_vm12 = vcmp.ge.f32.partialorder %v2376_v0, %v2462_v50  ;;  %v2529_v15 = vld [vmem:[#allocation2 + $0x18] sm:$0xff] }
 0x2ac   :  { %v1241_v56 = vsel %vm1220_vm11, %v2460_v5, %v2445_v42  ;;  %vm1271_vm13 = vcmp.ge.f32.partialorder %v2380_v60, %v2462_v50  ;;  %vm1354_vm14 = vcmp.gt.f32.partialorder %v2462_v50, %v2454_v40  ;;  %v2483_v59 = vsel %vm1151_vm7, %v1143_v37, %v1144_v43 }
 0x2ad   :  { %1245 = vst.msk [vmem:[#allocation2 + $0x8] sm:$0xff] %vm27_vm0, %v1241_v56  ;;  %v1375_v13 = vsel %vm1354_vm14, %v2462_v50, %v2454_v40  ;;  %v1154_v54 = vshra.s32 %v2483_v59, 16  ;;  %v1145_v51 = vsel %vm1137_vm9, %v2415_v31, 1073741824  ;;  %v1146_v8 = vsel %vm1138_vm10, %v2422_v3, 1073741824 }
 0x2ae   :  { %1379 = vst.msk [vmem:[#allocation2 + $0x28] sm:$0xff] %vm27_vm0, %v1375_v13  ;;  %v2497_v22 = vpop.xlane.xlu0 %1130  ;;  %v2499_v23 = vpop.xlane.xlu1 %1263  ;;  %vm1167_vm15 = vcmp.lt.s32.totalorder %v1145_v51, %v1146_v8  ;;  %v2502_v49 = vsel %vm1284_vm8, %v1276_v47, %v1277_v27  ;;  %v1278_v24 = vsel %vm1270_vm12, %v2415_v31, 1073741824  ;;  %v1279_v11 = vsel %vm1271_vm13, %v2422_v3, 1073741824 }
 0x2af   :  { %vm1139_vm1 = vcmp.ge.f32.partialorder %v2390_v21, %v2497_v22  ;;  %vm1140_vm2 = vcmp.ge.f32.partialorder %v2394_v9, %v2497_v22  ;;  %vm1221_vm4 = vcmp.gt.f32.partialorder %v2497_v22, %v2481_v57  ;;  %vm1272_vm5 = vcmp.ge.f32.partialorder %v2392_v16, %v2499_v23 }
 0x2b0   :  { %v1242_v14 = vsel %vm1221_vm4, %v2497_v22, %v2481_v57  ;;  %vm1355_vm7 = vcmp.gt.f32.partialorder %v2499_v23, %v2491_v6  ;;  %v2527_v12 = vcvt.s32.f32 %v1154_v54  ;;  %vm1273_vm8 = vcmp.ge.f32.partialorder %v2396_v18, %v2499_v23  ;;  %v1361_v22 = vld [vmem:[#allocation3 + $0x38] sm:$0xff] }
 0x2b1   :  { %1246 = vst.msk [vmem:[#allocation2 + $0x10] sm:$0xff] %vm27_vm0, %v1242_v14  ;;  %v1376_v0 = vsel %vm1355_vm7, %v2499_v23, %v2491_v6  ;;  %v2542_v61 = vsel %vm1167_vm15, %v1145_v51, %v1146_v8  ;;  %v1287_v35 = vshra.s32 %v2502_v49, 16  ;;  %v1147_v28 = vsel %vm1139_vm1, %v2415_v31, 1073741824 }
 0x2b2   :  { %1380 = vst.msk [vmem:[#allocation2 + $0x30] sm:$0xff] %vm27_vm0, %v1376_v0  ;;  %1157 = vmin.xlane.f32.xlu0 %v2527_v12  ;;  %v2547_v60 = vpop.xlane.xlu0 %1133  ;;  %v2549_v1 = vpop.xlane.xlu1 %1266  ;;  %v1170_v4 = vshra.s32 %v2542_v61, 16  ;;  %v1148_v55 = vsel %vm1140_vm2, %v2422_v3, 1073741824  ;;  %vm1300_vm9 = vcmp.lt.s32.totalorder %v1278_v24, %v1279_v11  ;;  %v1153_v18 = vand.u32 65535, %v2483_v59 }
 0x2b3   :  { %vm1141_vm10 = vcmp.ge.f32.partialorder %v2398_v62, %v2547_v60  ;;  %vm1142_vm12 = vcmp.ge.f32.partialorder %v2402_v29, %v2547_v60  ;;  %vm2744_vm13 = vcmp.gt.f32.partialorder %v2547_v60, %v2529_v15  ;;  %vm1274_vm15 = vcmp.ge.f32.partialorder %v2400_v63, %v2549_v1 }
 0x2b4   :  { %v1243_v52 = vsel %vm2744_vm13, %v2547_v60, %v2529_v15  ;;  %vm1275_vm1 = vcmp.ge.f32.partialorder %v2404_v44, %v2549_v1  ;;  %v1282_v41 = vsel %vm1274_vm15, %v2415_v31, 1073741824  ;;  %vm1356_vm2 = vcmp.gt.f32.partialorder %v2549_v1, %v2539_v33 }
 0x2b5   :  { %1247 = vst.msk [vmem:[#allocation2 + $0x18] sm:$0xff] %vm27_vm0, %v1243_v52  ;;  %v1283_v30 = vsel %vm1275_vm1, %v2422_v3, 1073741824  ;;  %v1377_v25 = vsel %vm1356_vm2, %v2549_v1, %v2539_v33  ;;  %v1172_v21 = vcvt.s32.f32 %v1170_v4  ;;  %v1289_v46 = vcvt.s32.f32 %v1287_v35 }
 0x2b6   :  { %1381 = vst.msk [vmem:[#allocation2 + $0x38] sm:$0xff] %vm27_vm0, %v1377_v25  ;;  %vm1183_vm13 = vcmp.lt.s32.totalorder %v1147_v28, %v1148_v55  ;;  %v1301_v17 = vsel %vm1300_vm9, %v1278_v24, %v1279_v11  ;;  %v1149_v9 = vsel %vm1141_vm10, %v2415_v31, 1073741824  ;;  %v1150_v53 = vsel %vm1142_vm12, %v2422_v3, 1073741824 }
 0x2b7   :  { %1173 = vmin.xlane.f32.xlu1 %v1172_v21  ;;  %1290 = vmin.xlane.f32.xlu0 %v1289_v46  ;;  %v1184_v19 = vsel %vm1183_vm13, %v1147_v28, %v1148_v55  ;;  %v1303_v63 = vshra.s32 %v1301_v17, 16  ;;  %vm1199_vm15 = vcmp.lt.s32.totalorder %v1149_v9, %v1150_v53  ;;  %v1280_v44 = vsel %vm1272_vm5, %v2415_v31, 1073741824 }
 0x2b8   :  { %v1186_v2 = vshra.s32 %v1184_v19, 16  ;;  %v1200_v48 = vsel %vm1199_vm15, %v1149_v9, %v1150_v53  ;;  %v1281_v62 = vsel %vm1273_vm8, %v2422_v3, 1073741824  ;;  %vm1332_vm10 = vcmp.lt.s32.totalorder %v1282_v41, %v1283_v30 }
 0x2b9   :  { %v1305_v7 = vcvt.s32.f32 %v1303_v63  ;;  %v1202_v29 = vshra.s32 %v1200_v48, 16  ;;  %vm1316_vm9 = vcmp.lt.s32.totalorder %v1280_v44, %v1281_v62  ;;  %v1333_v58 = vsel %vm1332_vm10, %v1282_v41, %v1283_v30  ;;  %v1394_v63 = vld [vmem:[#allocation2] sm:$0xff] }
 0x2ba   :  { %v1188_v10 = vcvt.s32.f32 %v1186_v2  ;;  %v1317_v39 = vsel %vm1316_vm9, %v1280_v44, %v1281_v62  ;;  %v1335_v45 = vshra.s32 %v1333_v58, 16  ;;  %v1155_v43 = vcvt.s32.f32 %v1153_v18  ;;  %v1395_v2 = vld [vmem:[#allocation2 + $0x8] sm:$0xff]  ;;  %v1485_v44 = vld [vmem:[#allocation2 + $0x20] sm:$0xff]  ;;  %v1396_v62 = vld [vmem:[#allocation2 + $0x10] sm:$0xff] }
 0x2bb   :  { %1306 = vmin.xlane.f32.xlu1 %v1305_v7  ;;  %v1319_v38 = vshra.s32 %v1317_v39, 16  ;;  %v1204_v32 = vcvt.s32.f32 %v1202_v29  ;;  %v1169_v47 = vand.u32 65535, %v2542_v61  ;;  %v1286_v27 = vand.u32 65535, %v2502_v49 }
 0x2bc   :  { %1189 = vmin.xlane.f32.xlu0 %v1188_v10  ;;  %v1337_v16 = vcvt.s32.f32 %v1335_v45  ;;  %v1302_v13 = vand.u32 65535, %v1301_v17  ;;  %v1185_v11 = vand.u32 65535, %v1184_v19  ;;  %v1318_v0 = vand.u32 65535, %v1317_v39  ;;  %v1397_v33 = vld [vmem:[#allocation2 + $0x18] sm:$0xff] }
 0x2bd   :  { %v1321_v37 = vcvt.s32.f32 %v1319_v38  ;;  %v1288_v8 = vcvt.s32.f32 %v1286_v27  ;;  %v1171_v24 = vcvt.s32.f32 %v1169_v47  ;;  %v1201_v4 = vand.u32 65535, %v1200_v48  ;;  %v1486_v48 = vld [vmem:[#allocation2 + $0x28] sm:$0xff]  ;;  %v1488_v1 = vld [vmem:[#allocation2 + $0x38] sm:$0xff] }
 0x2be   :  { %v1187_v49 = vcvt.s32.f32 %v1185_v11  ;;  %v1320_v41 = vcvt.s32.f32 %v1318_v0  ;;  %v1334_v30 = vand.u32 65535, %v1333_v58 }
 0x2bf   :  { %1322 = vmin.xlane.f32.xlu1 %v1321_v37 }
 0x2c0   :  { %1205 = vmin.xlane.f32.xlu0 %v1204_v32  ;;  %v1336_v53 = vcvt.s32.f32 %v1334_v30 }
 0x2c3   :  { %1338 = vmin.xlane.f32.xlu1 %v1337_v16 }
 0x33f   :  { %v1158_v3 = vpop.xlane.xlu0 %1157 }
 0x340   :  { %vm1159_vm5 = vcmp.eq.f32.partialorder %v2527_v12, %v1158_v3  ;;  %v1304_v12 = vcvt.s32.f32 %v1302_v13  ;;  %v1164_v29 = vcvt.f32.s32 %v1158_v3 }
 0x341   :  { %v1160_v56 = vsel %vm1159_vm5, %v1155_v43, inf }
 0x342   :  { %1161 = vmin.xlane.f32.xlu0 %v1160_v56  ;;  %v1165_v39 = vshll.u32 %v1164_v29, 16 }
 0x344   :  { %v1291_v54 = vpop.xlane.xlu0 %1290  ;;  %v1174_v51 = vpop.xlane.xlu1 %1173 }
 0x345   :  { %vm1175_vm8 = vcmp.eq.f32.partialorder %v1172_v21, %v1174_v51  ;;  %vm1292_vm12 = vcmp.eq.f32.partialorder %v1289_v46, %v1291_v54  ;;  %v1203_v21 = vcvt.s32.f32 %v1201_v4  ;;  %v1297_v58 = vcvt.f32.s32 %v1291_v54 }
 0x346   :  { %v1293_v14 = vsel %vm1292_vm12, %v1288_v8, inf  ;;  %v1176_v59 = vsel %vm1175_vm8, %v1171_v24, inf  ;;  %v1358_v8 = vld [vmem:[#allocation3 + $0x20] sm:$0xff] }
 0x347   :  { %1294 = vmin.xlane.f32.xlu0 %v1293_v14  ;;  %1177 = vmin.xlane.f32.xlu1 %v1176_v59 }
 0x348   :  { %v2607_v61 = vpop.xlane.xlu1 %1306 }
 0x349   :  { %v2609_v35 = vpop.xlane.xlu0 %1189  ;;  %vm1308_vm13 = vcmp.eq.f32.partialorder %v1305_v7, %v2607_v61  ;;  %v1487_v7 = vld [vmem:[#allocation2 + $0x30] sm:$0xff]  ;;  %v1313_v56 = vcvt.f32.s32 %v2607_v61 }
 0x34a   :  { %vm1191_vm1 = vcmp.eq.f32.partialorder %v1188_v10, %v2609_v35  ;;  %v1309_v28 = vsel %vm1308_vm13, %v1304_v12, inf  ;;  %v1196_v54 = vcvt.f32.s32 %v2609_v35 }
 0x34b   :  { %v1192_v55 = vsel %vm1191_vm1, %v1187_v49, inf  ;;  %1310 = vmin.xlane.f32.xlu1 %v1309_v28  ;;  %v1314_v20 = vshll.u32 %v1313_v56, 16  ;;  %v1359_v28 = vld [vmem:[#allocation3 + $0x28] sm:$0xff] }
 0x34c   :  { %1193 = vmin.xlane.f32.xlu0 %v1192_v55  ;;  %v2613_v52 = vpop.xlane.xlu1 %1322  ;;  %v1197_v49 = vshll.u32 %v1196_v54, 16  ;;  %v1225_v55 = vld [vmem:[#allocation3 + $0x10] sm:$0xff] }
 0x34d   :  { %v2615_v25 = vpop.xlane.xlu0 %1205  ;;  %vm1324_vm15 = vcmp.eq.f32.partialorder %v1321_v37, %v2613_v52  ;;  %v1223_v37 = vld [vmem:[#allocation3] sm:$0xff]  ;;  %v1329_v14 = vcvt.f32.s32 %v2613_v52 }
 0x34e   :  { %vm1207_vm9 = vcmp.eq.f32.partialorder %v1204_v32, %v2615_v25  ;;  %v1325_v46 = vsel %vm1324_vm15, %v1320_v41, inf  ;;  %v1180_v32 = vcvt.f32.s32 %v1174_v51  ;;  %v1224_v51 = vld [vmem:[#allocation3 + $0x8] sm:$0xff]  ;;  %v1212_v35 = vcvt.f32.s32 %v2615_v25 }
 0x34f   :  { %v1208_v17 = vsel %vm1207_vm9, %v1203_v21, inf  ;;  %1326 = vmin.xlane.f32.xlu1 %v1325_v46  ;;  %v1330_v41 = vshll.u32 %v1329_v14, 16 }
 0x350   :  { %1209 = vmin.xlane.f32.xlu0 %v1208_v17  ;;  %v2619_v9 = vpop.xlane.xlu1 %1338  ;;  %v1181_v27 = vshll.u32 %v1180_v32, 16  ;;  %v1213_v17 = vshll.u32 %v1212_v35, 16 }
 0x351   :  { %vm1340_vm10 = vcmp.eq.f32.partialorder %v1337_v16, %v2619_v9  ;;  %v1298_v16 = vshll.u32 %v1297_v58, 16  ;;  %v1345_v42 = vcvt.f32.s32 %v2619_v9 }
 0x352   :  { %v1341_v19 = vsel %vm1340_vm10, %v1336_v53, inf }
 0x353   :  { %1342 = vmin.xlane.f32.xlu1 %v1341_v19  ;;  %v1346_v50 = vshll.u32 %v1345_v42, 16 }
 0x364   :  { %1400 = vperm.xlu1 %1622, %v1394_v63   ;;  %v1360_v63 = vld [vmem:[#allocation3 + $0x30] sm:$0xff] }
 0x366   :  { %1405 = vperm.xlu0 %1620, %v1395_v2   ;;  %v1226_v2 = vld [vmem:[#allocation3 + $0x18] sm:$0xff] }
 0x368   :  { %1496 = vperm.xlu1 %1622, %v1486_v48  }
 0x36a   :  { %1491 = vperm.xlu0 %1620, %v1485_v44  }
 0x36c   :  { %1410 = vperm.xlu1 %1622, %v1396_v62  }
 0x36e   :  { %1501 = vperm.xlu0 %1620, %v1487_v7  }
 0x3cf   :  { %v1162_v10 = vpop.xlane.xlu0 %1161 }
 0x3d0   :  { %v1163_v38 = vcvt.f32.s32 %v1162_v10 }
 0x3d2   :  { %v1166_v45 = vadd.s32 %v1165_v39, %v1163_v38 }
 0x3d4   :  { %v1227_v18 = vsel %vm1219_vm6, %v1166_v45, %v1223_v37  ;;  %v1295_v43 = vpop.xlane.xlu0 %1294  ;;  %v1178_v47 = vpop.xlane.xlu1 %1177 }
 0x3d5   :  { %1232 = vst.msk [vmem:[#allocation3] sm:$0xff] %vm27_vm0, %v1227_v18  ;;  %v1296_v3 = vcvt.f32.s32 %v1295_v43  ;;  %v1179_v13 = vcvt.f32.s32 %v1178_v47 }
 0x3d7   :  { %v1299_v24 = vadd.s32 %v1298_v16, %v1296_v3  ;;  %v1182_v11 = vadd.s32 %v1181_v27, %v1179_v13 }
 0x3d8   :  { %v1311_v59 = vpop.xlane.xlu1 %1310 }
 0x3d9   :  { %v1362_v36 = vsel %vm1353_vm3, %v1299_v24, %v1358_v8  ;;  %v1228_v0 = vsel %vm1220_vm11, %v1182_v11, %v1224_v51  ;;  %v1194_v61 = vpop.xlane.xlu0 %1193  ;;  %v1312_v12 = vcvt.f32.s32 %v1311_v59  ;;  %vm2766_vm3 = vcmp.gt.f32.partialorder %v2547_v60, %v2529_v15  ;;  %v2767_v8 = vld [vmem:[#allocation7_spill] sm:$0xff] }
 0x3da   :  { %1366 = vst.msk [vmem:[#allocation3 + $0x20] sm:$0xff] %vm27_vm0, %v1362_v36  ;;  %1233 = vst.msk [vmem:[#allocation3 + $0x8] sm:$0xff] %vm27_vm0, %v1228_v0  ;;  %v1195_v4 = vcvt.f32.s32 %v1194_v61  ;;  %v1387_v51 = vadd.s32 8, %v2767_v8  ;;  %v1388_v14 = vadd.s32 16, %v2767_v8  ;;  %vm1422_vm11 = vcmask 261120  }
 0x3db   :  { %v1315_v52 = vadd.s32 %v1314_v20, %v1312_v12 }
 0x3dc   :  { %v1198_v34 = vadd.s32 %v1197_v49, %v1195_v4  ;;  %v1327_v26 = vpop.xlane.xlu1 %1326  ;;  %v1438_v30 = vld [vmem:[#allocation3] sm:$0xff]  ;;  %vm1391_vm6 = vcmp.eq.s32.totalorder %v1387_v51, %v2415_v31  ;;  %v1389_v49 = vadd.s32 24, %v2767_v8 }
 0x3dd   :  { %v1363_v5 = vsel %vm1354_vm14, %v1315_v52, %v1359_v28  ;;  %v1210_v21 = vpop.xlane.xlu0 %1209  ;;  %v1328_v25 = vcvt.f32.s32 %v1327_v26  ;;  %v1442_v46 = vcvt.s32.f32 %v1438_v30  ;;  %vm1392_vm14 = vcmp.eq.s32.totalorder %v1388_v14, %v2415_v31 }
 0x3de   :  { %v1229_v53 = vsel %vm1221_vm4, %v1198_v34, %v1225_v55  ;;  %1367 = vst.msk [vmem:[#allocation3 + $0x28] sm:$0xff] %vm27_vm0, %v1363_v5  ;;  %v1211_v19 = vcvt.f32.s32 %v1210_v21  ;;  %vm1393_vm4 = vcmp.eq.s32.totalorder %v1389_v49, %v2415_v31 }
 0x3df   :  { %1234 = vst.msk [vmem:[#allocation3 + $0x10] sm:$0xff] %vm27_vm0, %v1229_v53  ;;  %v1331_v9 = vadd.s32 %v1330_v41, %v1328_v25  ;;  %1448 = vperm.xlu0 %1620, %v1442_v46  }
 0x3e0   :  { %v1214_v48 = vadd.s32 %v1213_v17, %v1211_v19  ;;  %v1343_v40 = vpop.xlane.xlu1 %1342 }
 0x3e1   :  { %v1364_v44 = vsel %vm1355_vm7, %v1331_v9, %v1360_v63  ;;  %v1344_v62 = vcvt.f32.s32 %v1343_v40  ;;  %v1528_v7 = vld [vmem:[#allocation3 + $0x20] sm:$0xff]  ;;  %v1439_v39 = vld [vmem:[#allocation3 + $0x8] sm:$0xff]  ;;  %vm1436_vm7 = vcmask 253952  }
 0x3e2   :  { %v1230_v57 = vsel %vm2766_vm3, %v1214_v48, %v1226_v2  ;;  %1368 = vst.msk [vmem:[#allocation3 + $0x30] sm:$0xff] %vm27_vm0, %v1364_v44  ;;  %v1532_v29 = vcvt.s32.f32 %v1528_v7  ;;  %v1443_v58 = vcvt.s32.f32 %v1439_v39 }
 0x3e3   :  { %1235 = vst.msk [vmem:[#allocation3 + $0x18] sm:$0xff] %vm27_vm0, %v1230_v57  ;;  %v1347_v10 = vadd.s32 %v1346_v50, %v1344_v62 }
 0x3e4   :  { %1538 = vperm.xlu1 %1622, %v1532_v29   ;;  %v1401_v27 = vpop.permute.xlu1 %1400 }
 0x3e5   :  { %v1365_v6 = vsel %vm1356_vm2, %v1347_v10, %v1361_v22  ;;  %v1529_v23 = vld [vmem:[#allocation3 + $0x28] sm:$0xff]  ;;  %v1406_v47 = vpop.permute.xlu0 %1405 }
 0x3e6   :  { %1369 = vst.msk [vmem:[#allocation3 + $0x38] sm:$0xff] %vm27_vm0, %v1365_v6  ;;  %v1533_v38 = vcvt.s32.f32 %v1529_v23  ;;  %v1440_v15 = vld [vmem:[#allocation3 + $0x10] sm:$0xff]  ;;  %vm1390_vm0 = vcmp.eq.s32.totalorder %v2767_v8, %v2415_v31  ;;  %v1419_v20 = vsel %vm1391_vm6, %v1406_v47, 0.0 }
 0x3e7   :  { %v1444_v32 = vcvt.s32.f32 %v1440_v15  ;;  %v1418_v59 = vsel %vm1390_vm0, %v1401_v27, 0.0  ;;  %v1424_v4 = vsel %vm1422_vm11, %v1419_v20, 0.0 }
 0x3e8   :  { %1453 = vperm.xlu1 %1622, %v1443_v58   ;;  %1543 = vperm.xlu0 %1620, %v1533_v38   ;;  %v1497_v3 = vpop.permute.xlu1 %1496  ;;  %v1423_v35 = vsel %vm1422_vm11, %v1418_v59, 0.0 }
 0x3e9   :  { %v1530_v60 = vld [vmem:[#allocation3 + $0x30] sm:$0xff]  ;;  %v1492_v56 = vpop.permute.xlu0 %1491  ;;  %v1510_v28 = vsel %vm1391_vm6, %v1497_v3, 0.0  ;;  %v1425_v39 = vadd.f32 %v1424_v4, %v1423_v35 }
 0x3ea   :  { %v1534_v37 = vcvt.s32.f32 %v1530_v60  ;;  %v1441_v45 = vld [vmem:[#allocation3 + $0x18] sm:$0xff]  ;;  %v1509_v41 = vsel %vm1390_vm0, %v1492_v56, 0.0  ;;  %v1514_v9 = vsel %vm1422_vm11, %v1510_v28, 0.0 }
 0x3eb   :  { %v1445_v18 = vcvt.s32.f32 %v1441_v45  ;;  %v1513_v2 = vsel %vm1422_vm11, %v1509_v41, 0.0 }
 0x3ec   :  { %1458 = vperm.xlu1 %1622, %v1444_v32   ;;  %1548 = vperm.xlu0 %1620, %v1534_v37   ;;  %v1411_v54 = vpop.permute.xlu1 %1410  ;;  %v1515_v6 = vadd.f32 %v1514_v9, %v1513_v2 }
 0x3ed   :  { %v1531_v16 = vld [vmem:[#allocation3 + $0x38] sm:$0xff]  ;;  %v1502_v13 = vpop.permute.xlu0 %1501  ;;  %v1420_v34 = vsel %vm1392_vm14, %v1411_v54, 0.0 }
 0x3ee   :  { %v1535_v43 = vcvt.s32.f32 %v1531_v16  ;;  %v1511_v21 = vsel %vm1392_vm14, %v1502_v13, 0.0  ;;  %v1426_v44 = vsel %vm1422_vm11, %v1420_v34, 0.0 }
 0x3ef   :  { %v1516_v50 = vsel %vm1422_vm11, %v1511_v21, 0.0  ;;  %v1427_v32 = vadd.f32 %v1426_v44, %v1425_v39 }
 0x3f0   :  { %1463 = vperm.xlu1 %1622, %v1445_v18   ;;  %1553 = vperm.xlu0 %1620, %v1535_v43   ;;  %v1517_v60 = vadd.f32 %v1516_v50, %v1515_v6 }
 0x3f4   :  { %1415 = vperm.xlu1 %1622, %v1397_v33   ;;  %1506 = vperm.xlu0 %1620, %v1488_v1  }
 0x45e   :  { %v1449_v24 = vpop.permute.xlu0 %1448 }
 0x45f   :  { %v1466_v55 = vsel %vm1390_vm0, %v1449_v24, 0.0 }
 0x460   :  { %v1470_v17 = vsel %vm1422_vm11, %v1466_v55, 0.0 }
 0x463   :  { %v1539_v11 = vpop.permute.xlu1 %1538 }
 0x464   :  { %v1556_v52 = vsel %vm1390_vm0, %v1539_v11, 0.0 }
 0x465   :  { %v1560_v53 = vsel %vm1422_vm11, %v1556_v52, 0.0 }
 0x467   :  { %v1544_v36 = vpop.permute.xlu0 %1543  ;;  %v1454_v0 = vpop.permute.xlu1 %1453 }
 0x468   :  { %v1557_v61 = vsel %vm1391_vm6, %v1544_v36, 0.0  ;;  %v1467_v12 = vsel %vm1391_vm6, %v1454_v0, 0.0 }
 0x469   :  { %v1561_v26 = vsel %vm1422_vm11, %v1557_v61, 0.0  ;;  %v1471_v30 = vsel %vm1422_vm11, %v1467_v12, 0.0 }
 0x46a   :  { %v1562_v48 = vadd.f32 %v1561_v26, %v1560_v53  ;;  %v1472_v40 = vadd.f32 %v1471_v30, %v1470_v17 }
 0x46b   :  { %v1549_v42 = vpop.permute.xlu0 %1548  ;;  %v1459_v5 = vpop.permute.xlu1 %1458 }
 0x46c   :  { %v1558_v25 = vsel %vm1392_vm14, %v1549_v42, 0.0  ;;  %v1468_v46 = vsel %vm1392_vm14, %v1459_v5, 0.0 }
 0x46d   :  { %v1563_v19 = vsel %vm1422_vm11, %v1558_v25, 0.0  ;;  %v1473_v63 = vsel %vm1422_vm11, %v1468_v46, 0.0 }
 0x46e   :  { %v1564_v57 = vadd.f32 %v1563_v19, %v1562_v48  ;;  %v1474_v22 = vadd.f32 %v1473_v63, %v1472_v40 }
 0x46f   :  { %v1554_v62 = vpop.permute.xlu0 %1553  ;;  %v1464_v7 = vpop.permute.xlu1 %1463 }
 0x470   :  { %v1559_v29 = vsel %vm1393_vm4, %v1554_v62, 0.0  ;;  %v1469_v10 = vsel %vm1393_vm4, %v1464_v7, 0.0 }
 0x471   :  { %v1565_v23 = vsel %vm1422_vm11, %v1559_v29, 0.0  ;;  %v1475_v58 = vsel %vm1422_vm11, %v1469_v10, 0.0 }
 0x472   :  { %v1566_v38 = vadd.f32 %v1565_v23, %v1564_v57  ;;  %v1476_v15 = vadd.f32 %v1475_v58, %v1474_v22 }
 0x473   :  { %v1507_v37 = vpop.permute.xlu0 %1506  ;;  %v1416_v45 = vpop.permute.xlu1 %1415 }
 0x474   :  { %v1567_v16 = vrot.slane %v1566_v38, 4  ;;  %v1477_v18 = vrot.slane %v1476_v15, 4  ;;  %v1512_v43 = vsel %vm1393_vm4, %v1507_v37, 0.0  ;;  %v1421_v33 = vsel %vm1393_vm4, %v1416_v45, 0.0 }
 0x475   :  { %v1518_v1 = vsel %vm1422_vm11, %v1512_v43, 0.0  ;;  %v1428_v47 = vsel %vm1422_vm11, %v1421_v33, 0.0 }
 0x476   :  { %v1568_v27 = vadd.f32 %v1567_v16, %v1566_v38  ;;  %v1478_v56 = vadd.f32 %v1477_v18, %v1476_v15  ;;  %v1519_v3 = vadd.f32 %v1518_v1, %v1517_v60  ;;  %v1429_v13 = vadd.f32 %v1428_v47, %v1427_v32 }
 0x478   :  { %v1569_v54 = vrot.slane %v1568_v27, 2  ;;  %v1479_v8 = vrot.slane %v1478_v56, 2  ;;  %v1520_v51 = vrot.slane %v1519_v3, 4  ;;  %v1430_v24 = vrot.slane %v1429_v13, 4 }
 0x47a   :  { %v1570_v11 = vadd.f32 %v1569_v54, %v1568_v27  ;;  %v1480_v14 = vadd.f32 %v1479_v8, %v1478_v56  ;;  %v1521_v59 = vadd.f32 %v1520_v51, %v1519_v3  ;;  %v1431_v20 = vadd.f32 %v1430_v24, %v1429_v13 }
 0x47c   :  { %v1571_v36 = vrot.slane %v1570_v11, 1  ;;  %v1481_v0 = vrot.slane %v1480_v14, 1  ;;  %v1522_v31 = vrot.slane %v1521_v59, 2  ;;  %v1432_v61 = vrot.slane %v1431_v20, 2 }
 0x47e   :  { %v1572_v12 = vadd.f32 %v1571_v36, %v1570_v11  ;;  %v1482_v49 = vadd.f32 %v1481_v0, %v1480_v14  ;;  %v1523_v35 = vadd.f32 %v1522_v31, %v1521_v59  ;;  %v1433_v4 = vadd.f32 %v1432_v61, %v1431_v20 }
 0x480   :  { %v1590_v28 = vtrunc.f32 %v1572_v12  ;;  %v1588_v55 = vtrunc.f32 %v1482_v49  ;;  %v1524_v52 = vrot.slane %v1523_v35, 1  ;;  %v1434_v41 = vrot.slane %v1433_v4, 1 }
 0x482   :  { %v1591_v34 = vcvt.f32.s32 %v1590_v28  ;;  %v1589_v26 = vcvt.f32.s32 %v1588_v55  ;;  %v1525_v30 = vadd.f32 %v1524_v52, %v1523_v35  ;;  %v1435_v42 = vadd.f32 %v1434_v41, %v1433_v4 }
 0x484   :  { %1587 = vst.msk [vmem:[%s2728_s5 + $0x1] sm:$0x1] %vm1436_vm7, %v1591_v34  ;;  %1484 = vst.msk [vmem:[%s2728_s5] sm:$0x1] %vm1436_vm7, %v1589_v26 }
 0x485   :  { %1586 = vst.msk [vmem:[%s2729_s6 + $0x1] sm:$0x1] %vm1436_vm7, %v1525_v30  ;;  %1437 = vst.msk [vmem:[%s2729_s6] sm:$0x1] %vm1436_vm7, %v1435_v42 }

</bundles_post_ra>
